<compile_context>
chip_gen: v7x
topology: tpu7x:2x2x1
jax: 0.10.0
libtpu: 0.0.40
codegen_flags: <defaults>
</compile_context>

<pallas_src>
import functools

import jax
import jax.numpy as jnp
from jax import lax
from jax.experimental import pallas as pl
from jax.experimental.pallas import tpu as pltpu


def _round_up(x, m):
    return ((x + m - 1) // m) * m


def _cnn_encoder_layer_kernel(x_ref, w_ref, y_ref, *, kernel_width, pad,
                              compute_dtype):
    """One grid step: block_b batch rows, all channels, full time window.

    x_ref: (Bblk, Cin, T)    NCW activations (already in compute_dtype)
    w_ref: (2*Cout, Kdim)    im2col weights; bias folded as an extra column;
                             contraction zero-padded to a lane multiple
    y_ref: (Bblk, Cout, T)   NCW output block (GLU applied)
    """
    bblk, cin, T = x_ref.shape
    two_cout, kdim = w_ref.shape
    cout = two_cout // 2
    K = kernel_width
    extra = kdim - K * cin          # >= 1: bias (ones) row + zero padding rows

    # ---- im2col RHS, built ONCE per grid step (hoisted out of row loops) ----
    # "same" zero padding along time, built directly in VMEM (no HBM pass).
    x = x_ref[...]
    zpad = jnp.zeros((bblk, cin, pad), dtype=compute_dtype)
    xp = jnp.concatenate([zpad, x, zpad], axis=-1)      # (Bblk, Cin, T + 2*pad)

    # Stack the K shifted taps along sublanes (contraction dim) per batch row,
    # then merge the batch rows into the lane/N dimension -> N = Bblk*T.
    cols = []
    for b in range(bblk):                               # tiny static unroll
        cols.append(jnp.concatenate([xp[b, :, k:k + T] for k in range(K)],
                                    axis=0))            # (K*Cin, T)
    data = cols[0] if bblk == 1 else jnp.concatenate(cols, axis=-1)
    # data: (K*Cin, Bblk*T)

    # Bias row (ones, matches the bias column of w) + zero contraction padding.
    row_id = lax.broadcasted_iota(jnp.int32, (extra, bblk * T), 0)
    tail = (row_id == 0).astype(compute_dtype)          # (extra, Bblk*T)
    rhs = jnp.concatenate([data, tail], axis=0)         # (Kdim, Bblk*T)

    # ---- one deep matmul per grid step: (2*Cout, Kdim) @ (Kdim, Bblk*T) -----
    acc = jnp.dot(w_ref[...], rhs, preferred_element_type=jnp.float32)

    # GLU along channels (sublanes), computed once for the whole block.
    glu = acc[:cout, :] * jax.nn.sigmoid(acc[cout:, :])  # (Cout, Bblk*T) f32
    for b in range(bblk):
        y_ref[b] = glu[:, b * T:(b + 1) * T].astype(y_ref.dtype)
    # NOTE: map_residual_to_output is always None in the PyTorch module, so the
    # residual add in forward() never executes -> none here.
    # TODO(synk): add the residual projection if the module ever sets it.


def cnn_encoder_layer(x, w_folded, *, kernel_width, block_b=2,
                      compute_dtype=jnp.float32):
    """x: (B, in_channels, src_len) NCW.  w_folded from prepare_kernel_weights.

    Returns (B, out_channels, src_len) in x's dtype.
    """
    assert kernel_width % 2 == 1, "only odd sized kernels are supported"
    pad = (kernel_width - 1) // 2
    B, cin, T = x.shape
    two_cout, kdim = w_folded.shape
    cout = two_cout // 2
    out_dtype = x.dtype

    # Pad the batch up to a multiple of block_b (instead of a block_b=1
    # fallback): keeps the grid even for v7x's two TCs and keeps N wide.
    b_pad = (-B) % block_b
    if b_pad:
        x = jnp.pad(x, ((0, b_pad), (0, 0), (0, 0)))
    Bp = B + b_pad

    # Cast operands in the wrapper (not per-block in the kernel): bf16 operands
    # are MXU-native on v5e/v6e/v7x and halve activation DMA bytes; the matmul
    # accumulation stays f32 either way.
    x = x.astype(compute_dtype)
    w_folded = w_folded.astype(compute_dtype)

    kernel = functools.partial(_cnn_encoder_layer_kernel,
                               kernel_width=kernel_width, pad=pad,
                               compute_dtype=compute_dtype)

    y = pl.pallas_call(
        kernel,
        out_shape=jax.ShapeDtypeStruct((Bp, cout, T), out_dtype),
        grid=(Bp // block_b,),
        in_specs=[
            pl.BlockSpec((block_b, cin, T), lambda i: (i, 0, 0)),
            pl.BlockSpec((two_cout, kdim), lambda i: (0, 0)),
        ],
        out_specs=pl.BlockSpec((block_b, cout, T), lambda i: (i, 0, 0)),
        compiler_params=pltpu.CompilerParams(
            dimension_semantics=("parallel",)),
        # TODO(synk): for production ConvS2S sizes (Cout=512, src_len >= 1k) on
        # v7x (64 MiB VMEM), add a T-tile grid axis with a pad-wide halo, set
        # vmem_limit_bytes explicitly, and single-buffer the grid-invariant
        # weight block (pipeline_mode=pl.Buffered(1)).
    )(x, w_folded)
    return y[:B] if b_pad else y


def prepare_kernel_weights(w, bias):
    """One-time param prep (plain JAX glue, outside the kernel).

    w:    (2*Cout, Cin, K) effective conv weight (weight_norm already folded).
    bias: (2*Cout,)
    Returns (2*Cout, Kdim): taps flattened tap-major along the contraction dim
    (im2col layout), bias appended as an extra column (matched by a ones row in
    the kernel's RHS), contraction zero-padded to a multiple of 128 lanes.
    """
    two_cout, cin, K = w.shape
    w_flat = jnp.transpose(w, (0, 2, 1)).reshape(two_cout, K * cin)
    kdim = _round_up(K * cin + 1, 128)
    zeros = jnp.zeros((two_cout, kdim - K * cin - 1), w.dtype)
    return jnp.concatenate([w_flat, bias[:, None], zeros], axis=1)


def init_params(key, in_channels, out_channels, kernel_width):
    """Deterministic synthetic params; weight_norm (g*v/||v||, dim=0) folded."""
    assert kernel_width % 2 == 1, "only odd sized kernels are supported"
    k_v, k_g, k_b = jax.random.split(key, 3)
    # torch layout: weight (2*Cout, Cin, K); weight_norm over (Cin, K) per row.
    v = 0.1 * jax.random.normal(
        k_v, (2 * out_channels, in_channels, kernel_width), jnp.float32)
    g = 1.0 + 0.1 * jax.random.normal(k_g, (2 * out_channels, 1, 1), jnp.float32)
    w = g * v / jnp.sqrt(jnp.sum(v * v, axis=(1, 2), keepdims=True))
    bias = 0.1 * jax.random.normal(k_b, (2 * out_channels,), jnp.float32)
    return {"conv_w": w, "conv_b": bias}


def reference(x, params):
    """Pure-JAX reference of the PyTorch forward (eval mode)."""
    w = params["conv_w"]                    # (2*Cout, Cin, K)
    bias = params["conv_b"]                 # (2*Cout,)
    K = w.shape[-1]
    pad = (K - 1) // 2
    B, cin, T = x.shape
    xp = jnp.pad(x, ((0, 0), (0, 0), (pad, pad)))
    out = sum(jnp.einsum("oc,bct->bot", w[:, :, k], xp[:, :, k:k + T])
              for k in range(K)) + bias[None, :, None]
    cout = out.shape[1] // 2
    content, gate = out[:, :cout], out[:, cout:]
    return content * jax.nn.sigmoid(gate)   # F.glu(dim=1); residual branch dead


if __name__ == "__main__":
    B = 4                 # batch
    in_channels = 64      # embed_size
    out_channels = 128    # GLU output width (conv produces 2*out_channels)
    src_len = 256         # multiple of 128 -> lane-dense stores; N = 2*256 = 512
    kernel_width = 3

    key = jax.random.PRNGKey(0)
    k_x, k_p = jax.random.split(key)
    x = jax.random.normal(k_x, (B, in_channels, src_len), jnp.float32)
    params = init_params(k_p, in_channels, out_channels, kernel_width)
    w_folded = prepare_kernel_weights(params["conv_w"], params["conv_b"])

    y_ref = reference(x, params)

    # f32 matmul path (tight correctness check).
    y = cnn_encoder_layer(x, w_folded, kernel_width=kernel_width,
                          block_b=2, compute_dtype=jnp.float32)
    jax.block_until_ready(y)
    assert y.shape == (B, out_channels, src_len)
    assert jnp.allclose(y, y_ref, atol=1e-4, rtol=1e-4)

    # bf16 matmul operands + f32 accumulation (MXU-native on all generations).
    y_bf = cnn_encoder_layer(x, w_folded, kernel_width=kernel_width,
                             block_b=2, compute_dtype=jnp.bfloat16)
    jax.block_until_ready(y_bf)
    assert jnp.allclose(y_bf, y_ref, atol=5e-2, rtol=5e-2)

    print("KERNEL_OK")
</pallas_src>

<mosaic_0001>
module attributes {stable_mosaic.version = 11 : i64} {
  func.func @_cnn_encoder_layer_kernel(%arg0: i32, %arg1: memref<2x64x256xf32, #tpu.memory_space<vmem>>, %arg2: memref<256x256xf32, #tpu.memory_space<vmem>>, %arg3: memref<2x128x256xf32, #tpu.memory_space<vmem>>) attributes {dimension_semantics = [#tpu.dimension_semantics<parallel>], iteration_bounds = array<i64: 2>, scalar_prefetch = 0 : i64, scratch_operands = 0 : i64, tpu.core_type = #tpu.core_type<tc>, window_params = [{transform_indices = @transform_0, window_bounds = array<i64: 2, 64, 256>}, {pipeline_mode = #tpu.pipeline_mode<synchronous>, transform_indices = @transform_1, window_bounds = array<i64: 256, 256>}, {transform_indices = @transform_2, window_bounds = array<i64: 2, 128, 256>}]} {
    %c0 = arith.constant 0 : index
    %c0_0 = arith.constant 0 : index
    %c0_1 = arith.constant 0 : index
    %0 = vector.load %arg1[%c0, %c0_0, %c0_1] : memref<2x64x256xf32, #tpu.memory_space<vmem>>, vector<2x64x256xf32>
    %cst = arith.constant 0.000000e+00 : f32
    %1 = vector.broadcast %cst : f32 to vector<2x64x1xf32>
    %2 = tpu.concatenate %1, %0, %1 in 2 : vector<2x64x1xf32>, vector<2x64x256xf32>, vector<2x64x1xf32> -> vector<2x64x258xf32>
    %3 = vector.extract_strided_slice %2 {offsets = [0, 0, 0], sizes = [1, 64, 256], strides = [1, 1, 1]} : vector<2x64x258xf32> to vector<1x64x256xf32>
    %4 = vector.shape_cast %3 : vector<1x64x256xf32> to vector<64x256xf32>
    %5 = vector.extract_strided_slice %2 {offsets = [0, 0, 1], sizes = [1, 64, 256], strides = [1, 1, 1]} : vector<2x64x258xf32> to vector<1x64x256xf32>
    %6 = vector.shape_cast %5 : vector<1x64x256xf32> to vector<64x256xf32>
    %7 = vector.extract_strided_slice %2 {offsets = [0, 0, 2], sizes = [1, 64, 256], strides = [1, 1, 1]} : vector<2x64x258xf32> to vector<1x64x256xf32>
    %8 = vector.shape_cast %7 : vector<1x64x256xf32> to vector<64x256xf32>
    %9 = tpu.concatenate %4, %6, %8 in 0 : vector<64x256xf32>, vector<64x256xf32>, vector<64x256xf32> -> vector<192x256xf32>
    %10 = vector.extract_strided_slice %2 {offsets = [1, 0, 0], sizes = [1, 64, 256], strides = [1, 1, 1]} : vector<2x64x258xf32> to vector<1x64x256xf32>
    %11 = vector.shape_cast %10 : vector<1x64x256xf32> to vector<64x256xf32>
    %12 = vector.extract_strided_slice %2 {offsets = [1, 0, 1], sizes = [1, 64, 256], strides = [1, 1, 1]} : vector<2x64x258xf32> to vector<1x64x256xf32>
    %13 = vector.shape_cast %12 : vector<1x64x256xf32> to vector<64x256xf32>
    %14 = vector.extract_strided_slice %2 {offsets = [1, 0, 2], sizes = [1, 64, 256], strides = [1, 1, 1]} : vector<2x64x258xf32> to vector<1x64x256xf32>
    %15 = vector.shape_cast %14 : vector<1x64x256xf32> to vector<64x256xf32>
    %16 = tpu.concatenate %11, %13, %15 in 0 : vector<64x256xf32>, vector<64x256xf32>, vector<64x256xf32> -> vector<192x256xf32>
    %17 = tpu.concatenate %9, %16 in 1 : vector<192x256xf32>, vector<192x256xf32> -> vector<192x512xf32>
    %18 = tpu.iota {dimensions = array<i32: 0>} : vector<64x512xi32>
    %c0_i32 = arith.constant 0 : i32
    %19 = vector.broadcast %c0_i32 : i32 to vector<64x512xi32>
    %20 = arith.cmpi eq, %18, %19 : vector<64x512xi32>
    %21 = arith.extui %20 : vector<64x512xi1> to vector<64x512xi32>
    %22 = arith.sitofp %21 : vector<64x512xi32> to vector<64x512xf32>
    %23 = tpu.concatenate %17, %22 in 0 : vector<192x512xf32>, vector<64x512xf32> -> vector<256x512xf32>
    %c0_2 = arith.constant 0 : index
    %c0_3 = arith.constant 0 : index
    %24 = vector.load %arg2[%c0_2, %c0_3] : memref<256x256xf32, #tpu.memory_space<vmem>>, vector<256x256xf32>
    %cst_4 = arith.constant dense<0.000000e+00> : vector<256x512xf32>
    %25 = tpu.matmul %24, %23, %cst_4 {dimension_numbers = #tpu.dot_dimension_numbers<[1], [0], [0], [1], [0, 0, 1, 1], [], []>} : vector<256x256xf32>, vector<256x512xf32>, vector<256x512xf32> -> vector<256x512xf32>
    %26 = vector.extract_strided_slice %25 {offsets = [0, 0], sizes = [128, 512], strides = [1, 1]} : vector<256x512xf32> to vector<128x512xf32>
    %27 = vector.extract_strided_slice %25 {offsets = [128, 0], sizes = [128, 512], strides = [1, 1]} : vector<256x512xf32> to vector<128x512xf32>
    %28 = arith.negf %27 : vector<128x512xf32>
    %29 = math.exp %28 : vector<128x512xf32>
    %cst_5 = arith.constant 1.000000e+00 : f32
    %30 = vector.broadcast %cst_5 : f32 to vector<128x512xf32>
    %31 = arith.addf %30, %29 : vector<128x512xf32>
    %32 = arith.divf %30, %31 : vector<128x512xf32>
    %33 = arith.mulf %26, %32 : vector<128x512xf32>
    %34 = vector.extract_strided_slice %33 {offsets = [0, 0], sizes = [128, 256], strides = [1, 1]} : vector<128x512xf32> to vector<128x256xf32>
    %c0_6 = arith.constant 0 : index
    %c0_7 = arith.constant 0 : index
    %c0_8 = arith.constant 0 : index
    %35 = vector.load %arg3[%c0_6, %c0_7, %c0_8] : memref<2x128x256xf32, #tpu.memory_space<vmem>>, vector<1x128x256xf32>
    %36 = vector.shape_cast %35 : vector<1x128x256xf32> to vector<128x256xf32>
    %37 = vector.shape_cast %34 : vector<128x256xf32> to vector<1x128x256xf32>
    tpu.vector_store %arg3[%c0_6, %c0_7, %c0_8], %37 {strides = array<i32>} : memref<2x128x256xf32, #tpu.memory_space<vmem>>, vector<1x128x256xf32>,
    %38 = vector.extract_strided_slice %33 {offsets = [0, 256], sizes = [128, 256], strides = [1, 1]} : vector<128x512xf32> to vector<128x256xf32>
    %c1 = arith.constant 1 : index
    %c0_9 = arith.constant 0 : index
    %c0_10 = arith.constant 0 : index
    %39 = vector.load %arg3[%c1, %c0_9, %c0_10] : memref<2x128x256xf32, #tpu.memory_space<vmem>>, vector<1x128x256xf32>
    %40 = vector.shape_cast %39 : vector<1x128x256xf32> to vector<128x256xf32>
    %41 = vector.shape_cast %38 : vector<128x256xf32> to vector<1x128x256xf32>
    tpu.vector_store %arg3[%c1, %c0_9, %c0_10], %41 {strides = array<i32>} : memref<2x128x256xf32, #tpu.memory_space<vmem>>, vector<1x128x256xf32>,
    return
  }
  func.func @transform_0(%arg0: i32) -> (i32, i32, i32) {
    %c0_i32 = arith.constant 0 : i32
    %c0_i32_0 = arith.constant 0 : i32
    %c0_i32_1 = arith.constant 0 : i32
    return %arg0, %c0_i32, %c0_i32_0 : i32, i32, i32
  }
  func.func @transform_1(%arg0: i32) -> (i32, i32) {
    %c0_i32 = arith.constant 0 : i32
    %c0_i32_0 = arith.constant 0 : i32
    %c0_i32_1 = arith.constant 0 : i32
    return %c0_i32, %c0_i32_0 : i32, i32
  }
  func.func @transform_2(%arg0: i32) -> (i32, i32, i32) {
    %c0_i32 = arith.constant 0 : i32
    %c0_i32_0 = arith.constant 0 : i32
    %c0_i32_1 = arith.constant 0 : i32
    return %arg0, %c0_i32, %c0_i32_0 : i32, i32, i32
  }
}

</mosaic_0001>

<bundles_post_ra>
// kernel: tpu_custom_call.1
= control target key start
LH: loop header
LB: loop body
LE: loop exit
PB: predicated region body
PF: predicated region fallthrough
CT: control target
= control target key end

     0   :  { %7 = vsyncpa [#allocation3], 0  ;;  %s3909_s0 = inlined_call_operand.hbm [shape: f32[4,64,256], index: 0, kind: input, shape index: {}]   ;;  %s3910_s1 = inlined_call_operand.hbm [shape: f32[256,256], index: 1, kind: input, shape index: {}]   ;;  %s3911_s2 = inlined_call_operand.hbm [shape: f32[4,128,256], index: 2, kind: output, shape index: {}]  }
   0x1   :  { %9 = vsyncpa [#allocation3 + $0x1], 0 }
   0x2   :  { %10 = vsyncpa [#allocation6], 0 }
   0x3   :  { %11 = vsyncpa [#allocation4], 0 }
   0x4   :  { %13 = vsyncpa [#allocation4 + $0x1], 0  ;;  %s3037_s9 = smov 0   ;;  %s3039_s10 = smov 0  }
   0x5   :  { %s3041_s11 = smov 0   ;;  %s3043_s12 = smov 0  }
   0x6 LB: > { %s3058_s13 = sadd.s32 4294967295, %s3009_s12   ;;  %s1981_s14 = sadd.s32 4294967294, %s3009_s12   ;;  %s3009_s12 = sphi %s3043_s12, %s3989_s12   ;;  %s3005_s11 = sphi %s3041_s11, %s3988_s11   ;;  %s3001_s10 = sphi %s3039_s10, %s3987_s10   ;;  %s2997_s9 = sphi %s3037_s9, %s3986_s9  }
   0x7   : > { %p39_p0 = scmp.ne.s32.totalorder %s3001_s10, %s2997_s9  ;;  %p3912_p1 = scmp.eq.s32.totalorder %s3058_s13, 0 }
   0x8   : > { %p90_p3 = scmp.eq.s32.totalorder %s1981_s14, 1  ;;  %p1982_p5 = scmp.ge.s32.totalorder %s3009_s12, 1 }
   0x9   : > { %p3067_p4 = por %p3912_p1, %p39_p0  ;;  %p97_p7 = scmp.lt.s32.totalorder %s3009_s12, 3 }
   0xa   : > { %p3072_p6 = por %p90_p3, %p39_p0  ;;  %s3011_s18 = smov [#allocation5]  }
   0xb   : > { %s3915_s15 = scalar_select %p3067_p4, 1, 0 }
   0xc   : > { %s3916_s16 = scalar_select %p3072_p6, 1, 0 }
   0xd   : > { %p3077_p8 = pnand %p1982_p5, %p97_p7  ;;  %s109_s19 = sshll.u32 %s3011_s18, 4  ;;  %s3081_s19 = int_to_ptr.vmem [resolvable:$true] %s109_s19 }
   0xe   : > { %s3093_s21 = sadd.s32 1, %s3009_s12   ;;  %s26_s22 = sadd.s32 1, %s3005_s11 }
   0xf   : > { %s3917_s17 = scalar_select %p3077_p8, 1, 0 }
  0x10   : > { %p2248_p9 = pneg %p3077_p8  ;;  %s23_s23 = ssub.s32 %s3009_s12, %s3093_s21 }
  0x11   : > { %s2881_s26 = scalar_lea.hbm %s3910_s1, 8192 }
  0x12   : > { %p3088_p11 = pnand %p2248_p9, %p3912_p1  ;;  %p2882_p12 = scmp.ne.s32.totalorder %s3910_s1, %s2881_s26 }
  0x13   : > { %p2888_p5 = scmp.lt.u32.totalorder %s2881_s26, %s3910_s1 }
  0x14   : > { %p2883_p13 = pneg %p3088_p11 }
  0x16   : > { %p2884_p0 = pnand %p2883_p13, %p2882_p12 }
  0x18   : > { %p2885_p3 = pneg %p2884_p0 }
  0x1a   : > { %p2890_p7 = pnand %p2888_p5, %p2885_p3 }
  0x1c   : > { %2893 = shalt.err (!%p2890_p7)
}
  0x1d   : > { %s2894_s3 = scalar_lea.vmem %s3081_s19, 8192  ;;  %p2902_p2 = scmp.lt.s32.totalorder %s3081_s19, %s3081_s19 }
  0x1e   : > { %p2895_p9 = scmp.ne.s32.totalorder %s3081_s19, %s2894_s3  ;;  %p2903_p6 = scmp.lt.s32.totalorder %s2894_s3, %s2894_s3 }
  0x20   : > { %p2897_p10 = pnand %p2895_p9, %p2883_p13  ;;  %p2904_p4 = por %p2903_p6, %p2902_p2 }
  0x22   : > { %p2898_p1 = pneg %p2897_p10 }
  0x24   : > { %p2905_p8 = pnand %p2904_p4, %p2898_p1 }
  0x26   : > { %2908 = shalt.err (!%p2905_p8)
}
  0x27   : > { %s3012_s4 = smov 256   ;;  %s3013_s5 = smov 16  }
  0x28   : > { %2251 = dma.hbm_to_vmem [thread:$0]  (!%p3088_p11), %s3910_s1, 8192, %s3081_s19, [#allocation6], %s3012_s4, %s3012_s4, %s3013_s5  }
  0x29   : > { %p24_p1 = scmp.eq.s32.totalorder %s23_s23, 0  ;;  %p33_p2 = scmp.ne.s32.totalorder %s3005_s11, %s3001_s10 }
  0x2a   : > { %p34_p4 = scmp.eq.s32.totalorder %s3009_s12, 0  ;;  %p2261_p6 = scmp.lt.s32.totalorder %s3009_s12, 2 }
  0x2b   : > { %s3127_s8 = scalar_select %p24_p1, %s3005_s11, %s26_s22  }
  0x2c   : > { %p35_p8 = por %p34_p4, %p33_p2  ;;  %p3919_p10 = scmp.eq.s32.totalorder %s3058_s13, 1 }
  0x2d   : > { %s123_s18 = sand.u32 1, %s3005_s11   ;;  %s2133_s20 = sshll.u32 %s3009_s12, 12 }
  0x2e   : > { %p3131_p12 = por %p3919_p10, %p33_p2  ;;  %s1985_s24 = sshll.u32 %s123_s18, 8 }
  0x2f   : > { %s3140_s27 = scalar_lea.hbm %s3909_s0, %s2133_s20  ;;  %s127_s19 = scalar_lea.vmem [#allocation2], %s1985_s24 }
  0x30   : > { %s135_s22 = sshll.u32 %s127_s19, 4  ;;  %p3142_p11 = pnand %p2261_p6, %p35_p8  ;;  %s3146_s22 = int_to_ptr.vmem [resolvable:$true] %s135_s22 }
  0x31   : > { %s3148_s28 = scalar_lea.sflag [#allocation3], %s123_s18  ;;  %s2909_s29 = scalar_lea.hbm %s3140_s27, 4096 }
  0x32   : > { %p2910_p13 = scmp.ne.s32.totalorder %s3140_s27, %s2909_s29  ;;  %p2911_p0 = pneg %p3142_p11 }
  0x33   : > { %s2914_s6 = scalar_lea.hbm %s3909_s0, 8192  ;;  %p2915_p7 = scmp.lt.u32.totalorder %s3140_s27, %s3909_s0 }
  0x34   : > { %p2912_p3 = pnand %p2911_p0, %p2910_p13  ;;  %p2916_p9 = scmp.lt.u32.totalorder %s2914_s6, %s2909_s29 }
  0x35   : > { %p2918_p2 = scmp.lt.u32.totalorder %s2909_s29, %s3140_s27 }
  0x36   : > { %p2913_p5 = pneg %p2912_p3  ;;  %p2917_p1 = por %p2916_p9, %p2915_p7 }
  0x38   : > { %p2919_p4 = por %p2918_p2, %p2917_p1 }
  0x3a   : > { %p2920_p6 = pnand %p2919_p4, %p2913_p5 }
  0x3c   : > { %2923 = shalt.err (!%p2920_p6)
}
  0x3d   : > { %s2924_s18 = scalar_lea.vmem %s3146_s22, 4096  ;;  %s3014_s24 = smov [#allocation2]  }
  0x3e   : > { %p2925_p8 = scmp.ne.s32.totalorder %s3146_s22, %s2924_s18  ;;  %s2929_s25 = sshll.u32 %s3014_s24, 4  ;;  %s2930_s25 = int_to_ptr.vmem [resolvable:$false] %s2929_s25 }
  0x3f   : > { %s2931_s26 = scalar_lea.vmem %s2930_s25, 8192  ;;  %p2932_p3 = scmp.lt.s32.totalorder %s3146_s22, %s2930_s25 }
  0x40   : > { %p2927_p10 = pnand %p2925_p8, %p2911_p0  ;;  %p2933_p7 = scmp.lt.s32.totalorder %s2931_s26, %s2924_s18 }
  0x42   : > { %p2928_p13 = pneg %p2927_p10  ;;  %p2934_p9 = por %p2933_p7, %p2932_p3 }
  0x44   : > { %p2935_p1 = pnand %p2934_p9, %p2928_p13 }
  0x46   : > { %2938 = shalt.err (!%p2935_p1)
}
  0x47   : > { %2255 = dma.hbm_to_vmem [thread:$0]  (!%p3142_p11), %s3140_s27, 4096, %s3146_s22, %s3148_s28, %s3012_s4, %s3012_s4, %s3013_s5  }
  0x48   : > { %p3922_p0 = scmp.ne.s32.totalorder %s3917_s17, 0 }
  0x4a   : > { %147 = sbr.rel (%p3922_p0) target bundleno = 868 (0x364), region = 28 }
  0x51   : > { %s3182_s19 = sand.u32 1, %s3001_s10   ;;  %p3923_p5 = scmp.ne.s32.totalorder %s3915_s15, 0 }
  0x52   : > { %s1990_s29 = sshll.u32 %s3182_s19, 8  ;;  %s150_s30 = scalar_lea.sflag [#allocation3], %s3182_s19 }
  0x53   : > { %s3186_s3 = scalar_lea.vmem [#allocation2], %s1990_s29 }
  0x54   : > { %2984 = dma.done.wait (%p3923_p5), %s150_s30, 4096  }
  0x55   : > { %2986 = vsyncadd (%p3923_p5), %s150_s30, 4294963200  ;;  %p3924_p11 = scmp.eq.s32.totalorder %s3058_s13, 0 }
  0x57   : > { %2988 = dma.done.wait (%p3924_p11), [#allocation6], 8192   ;;  %p3925_p2 = pmov %p3924_p11 }
  0x58   : > { %v196_v0 = vld [vmem:[%s3186_s3 + $0x80] sm:$0xff]  ;;  %v197_v1 = vld [vmem:[%s3186_s3 + $0x88] sm:$0xff]  ;;  %v198_v5 = vld [vmem:[%s3186_s3 + $0x90] sm:$0xff]  ;;  %s3015_s15 = smov 1   ;;  %vm308_vm0 = vcmask 7168   ;;  %s3016_s17 = smov 127  }
  0x59   : > { %2990 = vsyncadd (%p3925_p2), [#allocation6], 4294959104  ;;  %v180_v2 = vld [vmem:[%s3186_s3] sm:$0xff]  ;;  %v2315_v3 = vpack.i.bf16 %v197_v1, %v196_v0  ;;  %v181_v4 = vld [vmem:[%s3186_s3 + $0x8] sm:$0xff]  ;;  %s3017_s4 = smov 126   ;;  %vm469_vm3 = vcmask 1039360  }
  0x5a   : > { %v199_v6 = vld [vmem:[%s3186_s3 + $0x98] sm:$0xff]  ;;  %v2305_v7 = vpack.i.bf16 %v181_v4, %v180_v2  ;;  %v182_v8 = vld [vmem:[%s3186_s3 + $0x10] sm:$0xff]  ;;  %v184_v14 = vld [vmem:[%s3186_s3 + $0x20] sm:$0xff]  ;;  %vm550_vm4 = vcmask 1031168   ;;  %s1992_s5 = sshll.u32 %s3182_s19, 9  ;;  %s2135_s22 = sshll.u32 %s3058_s13, 13 }
  0x5b   : > { %v183_v9 = vld [vmem:[%s3186_s3 + $0x18] sm:$0xff]  ;;  %2316 = vrot.lane.b32.xlu1 %v2315_v3, %s3015_s15  ;;  %v2320_v10 = vpack.i.bf16 %v199_v6, %v198_v5  ;;  %v186_v12 = vld [vmem:[%s3186_s3 + $0x30] sm:$0xff]  ;;  %v185_v15 = vld [vmem:[%s3186_s3 + $0x28] sm:$0xff]  ;;  %s3614_s27 = scalar_lea.vmem [#allocation7], %s1992_s5  ;;  %s3861_s7 = scalar_lea.hbm %s3911_s2, %s2135_s22 }
  0x5c   : > { %2306 = vrot.lane.b32.xlu0 %v2305_v7, %s3015_s15  ;;  %v2310_v11 = vpack.i.bf16 %v183_v9, %v182_v8  ;;  %v187_v13 = vld [vmem:[%s3186_s3 + $0x38] sm:$0xff]  ;;  %v2325_v17 = vpack.i.bf16 %v185_v15, %v184_v14  ;;  %v202_v18 = vld [vmem:[%s3186_s3 + $0xb0] sm:$0xff]  ;;  %v200_v20 = vld [vmem:[%s3186_s3 + $0xa0] sm:$0xff]  ;;  %s1898_s23 = sshll.u32 %s3614_s27, 4  ;;  %s1884_s13 = scalar_lea.sflag [#allocation4], %s3182_s19  ;;  %s3863_s23 = int_to_ptr.vmem [resolvable:$true] %s1898_s23 }
  0x5d   : > { %v2330_v16 = vpack.i.bf16 %v187_v13, %v186_v12  ;;  %v203_v19 = vld [vmem:[%s3186_s3 + $0xb8] sm:$0xff]  ;;  %v201_v21 = vld [vmem:[%s3186_s3 + $0xa8] sm:$0xff]  ;;  %v190_v24 = vld [vmem:[%s3186_s3 + $0x50] sm:$0xff]  ;;  %s2939_s20 = scalar_lea.vmem %s3863_s23, 8192  ;;  %s3019_s18 = smov [#allocation7]  }
  0x5e   : > { %v2340_v22 = vpack.i.bf16 %v203_v19, %v202_v18  ;;  %v2335_v23 = vpack.i.bf16 %v201_v21, %v200_v20  ;;  %v191_v25 = vld [vmem:[%s3186_s3 + $0x58] sm:$0xff]  ;;  %v188_v26 = vld [vmem:[%s3186_s3 + $0x40] sm:$0xff]  ;;  %v189_v27 = vld [vmem:[%s3186_s3 + $0x48] sm:$0xff]  ;;  %p2940_p4 = scmp.ne.s32.totalorder %s3863_s23, %s2939_s20  ;;  %s2943_s24 = sshll.u32 %s3019_s18, 4  ;;  %s2944_s24 = int_to_ptr.vmem [resolvable:$false] %s2943_s24 }
  0x5f   : > { %2321 = vrot.lane.b32.xlu1 %v2320_v10, %s3015_s15  ;;  %v2350_v28 = vpack.i.bf16 %v191_v25, %v190_v24  ;;  %v2345_v29 = vpack.i.bf16 %v189_v27, %v188_v26  ;;  %v206_v30 = vld [vmem:[%s3186_s3 + $0xd0] sm:$0xff]  ;;  %v207_v31 = vld [vmem:[%s3186_s3 + $0xd8] sm:$0xff]  ;;  %v204_v32 = vld [vmem:[%s3186_s3 + $0xc0] sm:$0xff]  ;;  %s2945_s25 = scalar_lea.vmem %s2944_s24, 16384  ;;  %p2946_p10 = scmp.lt.s32.totalorder %s3863_s23, %s2944_s24 }
  0x60   : > { %2311 = vrot.lane.b32.xlu0 %v2310_v11, %s3015_s15  ;;  %v205_v33 = vld [vmem:[%s3186_s3 + $0xc8] sm:$0xff]  ;;  %v2360_v34 = vpack.i.bf16 %v207_v31, %v206_v30  ;;  %v194_v36 = vld [vmem:[%s3186_s3 + $0x70] sm:$0xff]  ;;  %v195_v37 = vld [vmem:[%s3186_s3 + $0x78] sm:$0xff]  ;;  %p2941_p6 = pnand %p2940_p4, %p3131_p12  ;;  %p2947_p13 = scmp.lt.s32.totalorder %s2945_s25, %s2939_s20 }
  0x61   : > { %v2355_v35 = vpack.i.bf16 %v205_v33, %v204_v32  ;;  %v192_v38 = vld [vmem:[%s3186_s3 + $0x60] sm:$0xff]  ;;  %v193_v39 = vld [vmem:[%s3186_s3 + $0x68] sm:$0xff]  ;;  %v2370_v40 = vpack.i.bf16 %v195_v37, %v194_v36  ;;  %v210_v42 = vld [vmem:[%s3186_s3 + $0xf0] sm:$0xff] }
  0x62   : > { %v2365_v41 = vpack.i.bf16 %v193_v39, %v192_v38  ;;  %v211_v43 = vld [vmem:[%s3186_s3 + $0xf8] sm:$0xff]  ;;  %v208_v44 = vld [vmem:[%s3186_s3 + $0xe0] sm:$0xff]  ;;  %v209_v45 = vld [vmem:[%s3186_s3 + $0xe8] sm:$0xff]  ;;  %p2942_p8 = pneg %p2941_p6  ;;  %p2948_p3 = por %p2947_p13, %p2946_p10 }
  0x63   : > { %2331 = vrot.lane.b32.xlu1 %v2330_v16, %s3015_s15  ;;  %v2380_v46 = vpack.i.bf16 %v211_v43, %v210_v42  ;;  %v2375_v47 = vpack.i.bf16 %v209_v45, %v208_v44  ;;  %vm1994_vm1 = vmneg %vm308_vm0 }
  0x64   : > { %2326 = vrot.lane.b32.xlu0 %v2325_v17, %s3015_s15  ;;  %vm3262_vm2 = vmpackc.low %vm1994_vm1, %vm1994_vm1  ;;  %p2949_p7 = pnand %p2948_p3, %p2942_p8 }
  0x67   : > { %2341 = vrot.lane.b32.xlu1 %v2340_v22, %s3015_s15 }
  0x68   : > { %2336 = vrot.lane.b32.xlu0 %v2335_v23, %s3015_s15 }
  0x6b   : > { %2351 = vrot.lane.b32.xlu1 %v2350_v28, %s3015_s15 }
  0x6c   : > { %2346 = vrot.lane.b32.xlu0 %v2345_v29, %s3015_s15 }
  0x6f   : > { %2361 = vrot.lane.b32.xlu1 %v2360_v34, %s3015_s15 }
  0x70   : > { %2356 = vrot.lane.b32.xlu0 %v2355_v35, %s3015_s15 }
  0x73   : > { %2371 = vrot.lane.b32.xlu1 %v2370_v40, %s3015_s15 }
  0x74   : > { %2366 = vrot.lane.b32.xlu0 %v2365_v41, %s3015_s15 }
  0x77   : > { %2381 = vrot.lane.b32.xlu1 %v2380_v46, %s3015_s15 }
  0x78   : > { %2376 = vrot.lane.b32.xlu0 %v2375_v47, %s3015_s15 }
  0xcd   : > { %v2317_v48 = vpop.permute.xlu1 %2316 }
  0xce   : > { %v2319_v49 = vunpack.i.h.bf16 %v2317_v48  ;;  %v2318_v50 = vunpack.i.l.bf16 %v2317_v48  ;;  %v2307_v51 = vpop.permute.xlu0 %2306 }
  0xcf   : > { %v2309_v52 = vunpack.i.h.bf16 %v2307_v51  ;;  %v2308_v53 = vunpack.i.l.bf16 %v2307_v51 }
  0xd0   : > { %v397_v54 = vsel %vm308_vm0, %v2319_v49, 0.0  ;;  %v317_v58 = vsel %vm308_vm0, %v2318_v50, %v2319_v49  ;;  %v381_v3 = vsel %vm308_vm0, 0.0, %v2318_v50 }
  0xd1   : > { %v389_v55 = vsel %vm308_vm0, %v2309_v52, 0.0  ;;  %v2322_v56 = vpop.permute.xlu1 %2321  ;;  %v309_v57 = vsel %vm308_vm0, %v2308_v53, %v2309_v52  ;;  %v3254_v2 = vpack.i.bf16 %v397_v54, %v317_v58  ;;  %v373_v21 = vsel %vm308_vm0, 0.0, %v2308_v53 }
  0xd2   : > { %v2324_v59 = vunpack.i.h.bf16 %v2322_v56  ;;  %v2323_v60 = vunpack.i.l.bf16 %v2322_v56  ;;  %v2312_v61 = vpop.permute.xlu0 %2311  ;;  %v3248_v62 = vpack.i.bf16 %v389_v55, %v309_v57 }
  0xd3   : > { %v2314_v63 = vunpack.i.h.bf16 %v2312_v61  ;;  %v2313_v0 = vunpack.i.l.bf16 %v2312_v61 }
  0xd4   : > { %2386 = vrot.lane.b32.xlu0 %v3248_v62, %s3016_s17  ;;  %v318_v1 = vsel %vm308_vm0, %v2323_v60, %v2324_v59  ;;  %v398_v4 = vsel %vm308_vm0, %v2324_v59, 0.0  ;;  %v2190_v15 = vpack.c.bf16 %v2323_v60, %v2318_v50  ;;  %v382_v26 = vsel %vm308_vm0, 0.0, %v2323_v60 }
  0xd5   : > { %v390_v5 = vsel %vm308_vm0, %v2314_v63, 0.0  ;;  %v2188_v6 = vpack.c.bf16 %v318_v1, %v317_v58  ;;  %v310_v7 = vsel %vm308_vm0, %v2313_v0, %v2314_v63  ;;  %v2332_v8 = vpop.permute.xlu1 %2331  ;;  %v374_v18 = vsel %vm308_vm0, 0.0, %v2313_v0 }
  0xd6   : > { %v3260_v9 = vpack.i.bf16 %v390_v5, %v310_v7  ;;  %v2136_v10 = vpack.c.bf16 %v310_v7, %v309_v57  ;;  %v2327_v12 = vpop.permute.xlu0 %2326  ;;  %v2334_v13 = vunpack.i.h.bf16 %v2332_v8  ;;  %v2333_v14 = vunpack.i.l.bf16 %v2332_v8 }
  0xd7   : > { %2189 = vmatprep.subr.bf16.mxu1 %v2188_v6  ;;  %v2329_v16 = vunpack.i.h.bf16 %v2327_v12  ;;  %v2328_v17 = vunpack.i.l.bf16 %v2327_v12  ;;  %v2138_v19 = vpack.c.bf16 %v2313_v0, %v2308_v53  ;;  %v3271_v20 = vpack.i.bf16 %v398_v4, %v318_v1 }
  0xd8   : > { %2391 = vrot.lane.b32.xlu1 %v3260_v9, %s3016_s17  ;;  %2396 = vrot.lane.b32.xlu0 %v3254_v2, %s3016_s17  ;;  %v312_v22 = vsel %vm308_vm0, %v2333_v14, %v2334_v13  ;;  %v3278_v24 = vpack.i.bf16 %v374_v18, %v373_v21  ;;  %v392_v37 = vsel %vm308_vm0, %v2334_v13, 0.0  ;;  %v3293_v39 = vpack.i.bf16 %v382_v26, %v381_v3 }
  0xd9   : > { %2137 = vmatprep.subr.bf16.mxu0 %v2136_v10  ;;  %2192 = vmatpush1.bf16.msk.msra.mxu1 %vm3262_vm2, %v2190_v15  ;;  %v391_v23 = vsel %vm308_vm0, %v2329_v16, 0.0  ;;  %v2342_v25 = vpop.permute.xlu1 %2341  ;;  %v311_v27 = vsel %vm308_vm0, %v2328_v17, %v2329_v16  ;;  %v2143_v28 = vpack.c.bf16 %v2333_v14, %v2328_v17  ;;  %v3306_v49 = vpack.i.bf16 %v392_v37, %v312_v22 }
  0xda   : > { %2140 = vmatpush1.bf16.msk.msra.mxu0 %vm3262_vm2, %v2138_v19  ;;  %v2337_v29 = vpop.permute.xlu0 %2336  ;;  %v2344_v30 = vunpack.i.h.bf16 %v2342_v25  ;;  %v2343_v31 = vunpack.i.l.bf16 %v2342_v25  ;;  %v2141_v32 = vpack.c.bf16 %v312_v22, %v311_v27  ;;  %v3288_v35 = vpack.i.bf16 %v391_v23, %v311_v27 }
  0xdb   : > { %v2339_v33 = vunpack.i.h.bf16 %v2337_v29  ;;  %v2338_v34 = vunpack.i.l.bf16 %v2337_v29  ;;  %v375_v53 = vsel %vm308_vm0, 0.0, %v2328_v17  ;;  %v376_v54 = vsel %vm308_vm0, 0.0, %v2333_v14 }
  0xdc   : > { %2401 = vrot.lane.b32.xlu1 %v3271_v20, %s3016_s17  ;;  %2406 = vrot.lane.b32.xlu0 %v3278_v24, %s3016_s17  ;;  %v320_v36 = vsel %vm308_vm0, %v2343_v31, %v2344_v30  ;;  %v400_v52 = vsel %vm308_vm0, %v2344_v30, 0.0  ;;  %v3327_v3 = vpack.i.bf16 %v376_v54, %v375_v53  ;;  %v384_v7 = vsel %vm308_vm0, 0.0, %v2343_v31 }
  0xdd   : > { %v399_v38 = vsel %vm308_vm0, %v2339_v33, 0.0  ;;  %2142 = vmatprep.subr.bf16.mxu0 %v2141_v32  ;;  %v319_v40 = vsel %vm308_vm0, %v2338_v34, %v2339_v33  ;;  %v2352_v41 = vpop.permute.xlu1 %2351  ;;  %v2195_v42 = vpack.c.bf16 %v2343_v31, %v2338_v34  ;;  %v3325_v1 = vpack.i.bf16 %v400_v52, %v320_v36 }
  0xde   : > { %2145 = vmatpush1.bf16.msk.msra.mxu0 %vm3262_vm2, %v2143_v28  ;;  %v2347_v43 = vpop.permute.xlu0 %2346  ;;  %v2193_v44 = vpack.c.bf16 %v320_v36, %v319_v40  ;;  %v2354_v45 = vunpack.i.h.bf16 %v2352_v41  ;;  %v3298_v46 = vunpack.i.l.bf16 %v2352_v41  ;;  %v3308_v50 = vpack.i.bf16 %v399_v38, %v319_v40 }
  0xdf   : > { %v2349_v47 = vunpack.i.h.bf16 %v2347_v43  ;;  %v3300_v48 = vunpack.i.l.bf16 %v2347_v43  ;;  %v383_v6 = vsel %vm308_vm0, 0.0, %v2338_v34 }
  0xe0   : > { %2411 = vrot.lane.b32.xlu1 %v3293_v39, %s3016_s17  ;;  %2416 = vrot.lane.b32.xlu0 %v3288_v35, %s3016_s17  ;;  %v314_v51 = vsel %vm308_vm0, %v3298_v46, %v2354_v45  ;;  %v394_v22 = vsel %vm308_vm0, %v2354_v45, 0.0  ;;  %v3345_v25 = vpack.i.bf16 %v384_v7, %v383_v6  ;;  %v378_v45 = vsel %vm308_vm0, 0.0, %v3298_v46 }
  0xe1   : > { %2194 = vmatprep.subr.bf16.mxu1 %v2193_v44  ;;  %v2362_v55 = vpop.permute.xlu1 %2361  ;;  %v313_v56 = vsel %vm308_vm0, %v3300_v48, %v2349_v47  ;;  %v2148_v57 = vpack.c.bf16 %v3298_v46, %v3300_v48  ;;  %v393_v5 = vsel %vm308_vm0, %v2349_v47, 0.0  ;;  %v2450_v36 = vpack.i.bf16 %v394_v22, %v314_v51 }
  0xe2   : > { %2197 = vmatpush1.bf16.msk.msra.mxu1 %vm3262_vm2, %v2195_v42  ;;  %v2357_v58 = vpop.permute.xlu0 %2356  ;;  %v2364_v59 = vunpack.i.h.bf16 %v2362_v55  ;;  %v2363_v60 = vunpack.i.l.bf16 %v2362_v55  ;;  %v2146_v61 = vpack.c.bf16 %v314_v51, %v313_v56  ;;  %v3340_v19 = vpack.i.bf16 %v393_v5, %v313_v56 }
  0xe3   : > { %v2359_v63 = vunpack.i.h.bf16 %v2357_v58  ;;  %v2358_v0 = vunpack.i.l.bf16 %v2357_v58  ;;  %v377_v44 = vsel %vm308_vm0, 0.0, %v3300_v48 }
  0xe4   : > { %2421 = vrot.lane.b32.xlu1 %v3306_v49, %s3016_s17  ;;  %2426 = vrot.lane.b32.xlu0 %v3308_v50, %s3016_s17  ;;  %v322_v4 = vsel %vm308_vm0, %v2363_v60, %v2364_v59  ;;  %v402_v40 = vsel %vm308_vm0, %v2364_v59, 0.0  ;;  %v2465_v52 = vpack.i.bf16 %v378_v45, %v377_v44  ;;  %v386_v54 = vsel %vm308_vm0, 0.0, %v2363_v60 }
  0xe5   : > { %2147 = vmatprep.subr.bf16.mxu0 %v2146_v61  ;;  %v321_v8 = vsel %vm308_vm0, %v2358_v0, %v2359_v63  ;;  %v2372_v10 = vpop.permute.xlu1 %2371  ;;  %v2200_v12 = vpack.c.bf16 %v2363_v60, %v2358_v0  ;;  %v401_v23 = vsel %vm308_vm0, %v2359_v63, 0.0  ;;  %v2460_v47 = vpack.i.bf16 %v402_v40, %v322_v4 }
  0xe6   : > { %2150 = vmatpush1.bf16.msk.msra.mxu0 %vm3262_vm2, %v2148_v57  ;;  %v2367_v13 = vpop.permute.xlu0 %2366  ;;  %v2198_v14 = vpack.c.bf16 %v322_v4, %v321_v8  ;;  %v2374_v15 = vunpack.i.h.bf16 %v2372_v10  ;;  %v2373_v16 = vunpack.i.l.bf16 %v2372_v10  ;;  %v2455_v37 = vpack.i.bf16 %v401_v23, %v321_v8 }
  0xe7   : > { %v2369_v17 = vunpack.i.h.bf16 %v2367_v13  ;;  %v2368_v18 = vunpack.i.l.bf16 %v2367_v13  ;;  %v385_v53 = vsel %vm308_vm0, 0.0, %v2358_v0 }
  0xe8   : > { %2431 = vrot.lane.b32.xlu1 %v3325_v1, %s3016_s17  ;;  %2436 = vrot.lane.b32.xlu0 %v3327_v3, %s3016_s17  ;;  %v316_v21 = vsel %vm308_vm0, %v2373_v16, %v2374_v15  ;;  %v396_v48 = vsel %vm308_vm0, %v2374_v15, 0.0  ;;  %v2470_v56 = vpack.i.bf16 %v386_v54, %v385_v53  ;;  %v380_v60 = vsel %vm308_vm0, 0.0, %v2373_v16 }
  0xe9   : > { %2199 = vmatprep.subr.bf16.mxu1 %v2198_v14  ;;  %v2382_v26 = vpop.permute.xlu1 %2381  ;;  %v315_v27 = vsel %vm308_vm0, %v2368_v18, %v2369_v17  ;;  %v2153_v28 = vpack.c.bf16 %v2373_v16, %v2368_v18  ;;  %v395_v51 = vsel %vm308_vm0, %v2369_v17, 0.0  ;;  %v2480_v11 = vpack.i.bf16 %v396_v48, %v316_v21 }
  0xea   : > { %2202 = vmatpush1.bf16.msk.msra.mxu1 %vm3262_vm2, %v2200_v12  ;;  %v2377_v29 = vpop.permute.xlu0 %2376  ;;  %v2384_v30 = vunpack.i.h.bf16 %v2382_v26  ;;  %v2383_v31 = vunpack.i.l.bf16 %v2382_v26  ;;  %v2151_v32 = vpack.c.bf16 %v316_v21, %v315_v27  ;;  %v2475_v46 = vpack.i.bf16 %v395_v51, %v315_v27 }
  0xeb   : > { %v2379_v33 = vunpack.i.h.bf16 %v2377_v29  ;;  %v2378_v34 = vunpack.i.l.bf16 %v2377_v29  ;;  %v379_v59 = vsel %vm308_vm0, 0.0, %v2368_v18 }
  0xec   : > { %2441 = vrot.lane.b32.xlu1 %v3345_v25, %s3016_s17  ;;  %2446 = vrot.lane.b32.xlu0 %v3340_v19, %s3016_s17  ;;  %v324_v38 = vsel %vm308_vm0, %v2383_v31, %v2384_v30  ;;  %v404_v58 = vsel %vm308_vm0, %v2384_v30, 0.0  ;;  %v2495_v63 = vpack.i.bf16 %v380_v60, %v379_v59  ;;  %v388_v4 = vsel %vm308_vm0, 0.0, %v2383_v31 }
  0xed   : > { %2152 = vmatprep.subr.bf16.mxu0 %v2151_v32  ;;  %v323_v41 = vsel %vm308_vm0, %v2378_v34, %v2379_v33  ;;  %v2205_v42 = vpack.c.bf16 %v2383_v31, %v2378_v34  ;;  %v403_v55 = vsel %vm308_vm0, %v2379_v33, 0.0  ;;  %v2490_v61 = vpack.i.bf16 %v404_v58, %v324_v38 }
  0xee   : > { %2155 = vmatpush1.bf16.msk.msra.mxu0 %vm3262_vm2, %v2153_v28  ;;  %v2203_v43 = vpack.c.bf16 %v324_v38, %v323_v41  ;;  %v2485_v57 = vpack.i.bf16 %v403_v55, %v323_v41  ;;  %v387_v0 = vsel %vm308_vm0, 0.0, %v2378_v34 }
  0xef   : > { %v2500_v5 = vpack.i.bf16 %v388_v4, %v387_v0 }
  0xf0   : > { %2451 = vrot.lane.b32.xlu1 %v2450_v36, %s3016_s17  ;;  %2456 = vrot.lane.b32.xlu0 %v2455_v37, %s3016_s17 }
  0xf1   : > { %2204 = vmatprep.subr.bf16.mxu1 %v2203_v43 }
  0xf2   : > { %2207 = vmatpush1.bf16.msk.msra.mxu1 %vm3262_vm2, %v2205_v42 }
  0xf4   : > { %2461 = vrot.lane.b32.xlu1 %v2460_v47, %s3016_s17  ;;  %2466 = vrot.lane.b32.xlu0 %v2465_v52, %s3016_s17 }
  0xf8   : > { %2471 = vrot.lane.b32.xlu1 %v2470_v56, %s3016_s17  ;;  %2476 = vrot.lane.b32.xlu0 %v2475_v46, %s3016_s17 }
  0xfc   : > { %2481 = vrot.lane.b32.xlu1 %v2480_v11, %s3016_s17  ;;  %2486 = vrot.lane.b32.xlu0 %v2485_v57, %s3016_s17 }
 0x100   : > { %2491 = vrot.lane.b32.xlu1 %v2490_v61, %s3016_s17  ;;  %2496 = vrot.lane.b32.xlu0 %v2495_v63, %s3016_s17 }
 0x104   : > { %2501 = vrot.lane.b32.xlu1 %v2500_v5, %s3016_s17  ;;  %2506 = vrot.lane.b32.xlu0 %v3248_v62, %s3017_s4  ;;  %v793_v62 = vld [vmem:[#allocation5 + $0x8] sm:$0xff] }
 0x105   : > { %920 = vmatprep.mubr.f32.mxu0 %v793_v62  ;;  %1177 = vmatprep.mubr.f32.mxu1 %v793_v62 }
 0x108   : > { %2511 = vrot.lane.b32.xlu1 %v3260_v9, %s3017_s4  ;;  %2516 = vrot.lane.b32.xlu0 %v3254_v2, %s3017_s4 }
 0x10c   : > { %2521 = vrot.lane.b32.xlu1 %v3271_v20, %s3017_s4  ;;  %2526 = vrot.lane.b32.xlu0 %v3278_v24, %s3017_s4 }
 0x110   : > { %2531 = vrot.lane.b32.xlu1 %v3293_v39, %s3017_s4  ;;  %2536 = vrot.lane.b32.xlu0 %v3288_v35, %s3017_s4 }
 0x114   : > { %2541 = vrot.lane.b32.xlu1 %v3306_v49, %s3017_s4  ;;  %2546 = vrot.lane.b32.xlu0 %v3308_v50, %s3017_s4 }
 0x118   : > { %2551 = vrot.lane.b32.xlu1 %v3325_v1, %s3017_s4  ;;  %2556 = vrot.lane.b32.xlu0 %v3327_v3, %s3017_s4 }
 0x11c   : > { %2561 = vrot.lane.b32.xlu1 %v3345_v25, %s3017_s4  ;;  %2566 = vrot.lane.b32.xlu0 %v3340_v19, %s3017_s4 }
 0x120   : > { %2571 = vrot.lane.b32.xlu1 %v2450_v36, %s3017_s4  ;;  %2576 = vrot.lane.b32.xlu0 %v2455_v37, %s3017_s4 }
 0x124   : > { %2581 = vrot.lane.b32.xlu1 %v2460_v47, %s3017_s4  ;;  %2586 = vrot.lane.b32.xlu0 %v2465_v52, %s3017_s4 }
 0x128   : > { %2591 = vrot.lane.b32.xlu1 %v2470_v56, %s3017_s4  ;;  %2596 = vrot.lane.b32.xlu0 %v2475_v46, %s3017_s4 }
 0x12c   : > { %2601 = vrot.lane.b32.xlu1 %v2480_v11, %s3017_s4  ;;  %2606 = vrot.lane.b32.xlu0 %v2485_v57, %s3017_s4 }
 0x130   : > { %2611 = vrot.lane.b32.xlu1 %v2490_v61, %s3017_s4  ;;  %2616 = vrot.lane.b32.xlu0 %v2495_v63, %s3017_s4 }
 0x134   : > { %2621 = vrot.lane.b32.xlu1 %v2500_v5, %s3017_s4 }
 0x146   : > { %v2387_v2 = vpop.permute.xlu0 %2386 }
 0x147   : > { %v2389_v9 = vunpack.i.h.bf16 %v2387_v2  ;;  %v2388_v20 = vunpack.i.l.bf16 %v2387_v2 }
 0x149   : > { %v471_v3 = vsel %vm469_vm3, %v2388_v20, %v2389_v9 }
 0x14a   : > { %v2392_v24 = vpop.permute.xlu1 %2391  ;;  %v2397_v35 = vpop.permute.xlu0 %2396 }
 0x14b   : > { %v2394_v39 = vunpack.i.h.bf16 %v2392_v24  ;;  %v2393_v49 = vunpack.i.l.bf16 %v2392_v24  ;;  %v2399_v50 = vunpack.i.h.bf16 %v2397_v35  ;;  %v2398_v1 = vunpack.i.l.bf16 %v2397_v35 }
 0x14d   : > { %v473_v6 = vsel %vm469_vm3, %v2393_v49, %v2394_v39  ;;  %v648_v18 = vsel %vm469_vm3, %v2398_v1, %v2399_v50 }
 0x14e   : > { %v2402_v7 = vpop.permute.xlu1 %2401  ;;  %v2407_v8 = vpop.permute.xlu0 %2406  ;;  %v2156_v10 = vpack.c.bf16 %v473_v6, %v471_v3 }
 0x14f   : > { %v2404_v12 = vunpack.i.h.bf16 %v2402_v7  ;;  %v2403_v13 = vunpack.i.l.bf16 %v2402_v7  ;;  %v2409_v14 = vunpack.i.h.bf16 %v2407_v8  ;;  %v2408_v15 = vunpack.i.l.bf16 %v2407_v8 }
 0x150   : > { %2157 = vmatprep.subr.bf16.mxu0 %v2156_v10 }
 0x151   : > { %v470_v16 = vsel %vm469_vm3, %v2408_v15, %v2388_v20  ;;  %v472_v17 = vsel %vm469_vm3, %v2409_v14, %v2393_v49  ;;  %v650_v19 = vsel %vm469_vm3, %v2403_v13, %v2404_v12 }
 0x152   : > { %v2412_v21 = vpop.permute.xlu1 %2411  ;;  %v2417_v22 = vpop.permute.xlu0 %2416  ;;  %v2158_v23 = vpack.c.bf16 %v472_v17, %v470_v16  ;;  %v2208_v25 = vpack.c.bf16 %v650_v19, %v648_v18 }
 0x153   : > { %v2414_v26 = vunpack.i.h.bf16 %v2412_v21  ;;  %v2413_v27 = vunpack.i.l.bf16 %v2412_v21  ;;  %v2419_v28 = vunpack.i.h.bf16 %v2417_v22  ;;  %v2418_v29 = vunpack.i.l.bf16 %v2417_v22 }
 0x154   : > { %2159 = vmatpush1.bf16.msra.mxu0 %v2158_v23  ;;  %2209 = vmatprep.subr.bf16.mxu1 %v2208_v25 }
 0x155   : > { %v647_v30 = vsel %vm469_vm3, %v2413_v27, %v2398_v1  ;;  %v649_v31 = vsel %vm469_vm3, %v2414_v26, %v2403_v13  ;;  %v475_v36 = vsel %vm469_vm3, %v2418_v29, %v2419_v28 }
 0x156   : > { %v2422_v32 = vpop.permute.xlu1 %2421  ;;  %v2427_v33 = vpop.permute.xlu0 %2426  ;;  %v2210_v34 = vpack.c.bf16 %v649_v31, %v647_v30 }
 0x157   : > { %v2424_v37 = vunpack.i.h.bf16 %v2422_v32  ;;  %v2423_v38 = vunpack.i.l.bf16 %v2422_v32  ;;  %v2429_v40 = vunpack.i.h.bf16 %v2427_v33  ;;  %v2428_v41 = vunpack.i.l.bf16 %v2427_v33 }
 0x158   : > { %2211 = vmatpush1.bf16.msra.mxu1 %v2210_v34 }
 0x159   : > { %v477_v42 = vsel %vm469_vm3, %v2423_v38, %v2424_v37  ;;  %v652_v47 = vsel %vm469_vm3, %v2428_v41, %v2429_v40 }
 0x15a   : > { %v2432_v43 = vpop.permute.xlu1 %2431  ;;  %v2437_v44 = vpop.permute.xlu0 %2436  ;;  %v2160_v45 = vpack.c.bf16 %v477_v42, %v475_v36 }
 0x15b   : > { %v2434_v51 = vunpack.i.h.bf16 %v2432_v43  ;;  %v2433_v52 = vunpack.i.l.bf16 %v2432_v43  ;;  %v2439_v53 = vunpack.i.h.bf16 %v2437_v44  ;;  %v2438_v54 = vunpack.i.l.bf16 %v2437_v44 }
 0x15c   : > { %2161 = vmatprep.subr.bf16.mxu0 %v2160_v45 }
 0x15d   : > { %v474_v46 = vsel %vm469_vm3, %v2438_v54, %v2418_v29  ;;  %v476_v48 = vsel %vm469_vm3, %v2439_v53, %v2423_v38  ;;  %v654_v55 = vsel %vm469_vm3, %v2433_v52, %v2434_v51 }
 0x15e   : > { %v2442_v56 = vpop.permute.xlu1 %2441  ;;  %v2447_v11 = vpop.permute.xlu0 %2446  ;;  %v2162_v57 = vpack.c.bf16 %v476_v48, %v474_v46  ;;  %v2212_v58 = vpack.c.bf16 %v654_v55, %v652_v47 }
 0x15f   : > { %v2444_v59 = vunpack.i.h.bf16 %v2442_v56  ;;  %v2443_v60 = vunpack.i.l.bf16 %v2442_v56  ;;  %v2449_v61 = vunpack.i.h.bf16 %v2447_v11  ;;  %v2448_v63 = vunpack.i.l.bf16 %v2447_v11 }
 0x160   : > { %2163 = vmatpush1.bf16.msra.mxu0 %v2162_v57  ;;  %2213 = vmatprep.subr.bf16.mxu1 %v2212_v58 }
 0x161   : > { %v651_v0 = vsel %vm469_vm3, %v2443_v60, %v2428_v41  ;;  %v653_v4 = vsel %vm469_vm3, %v2444_v59, %v2433_v52  ;;  %v479_v9 = vsel %vm469_vm3, %v2448_v63, %v2449_v61 }
 0x162   : > { %v2452_v5 = vpop.permute.xlu1 %2451  ;;  %v2457_v62 = vpop.permute.xlu0 %2456  ;;  %v2214_v2 = vpack.c.bf16 %v653_v4, %v651_v0 }
 0x163   : > { %v2454_v20 = vunpack.i.h.bf16 %v2452_v5  ;;  %v2453_v24 = vunpack.i.l.bf16 %v2452_v5  ;;  %v2459_v35 = vunpack.i.h.bf16 %v2457_v62  ;;  %v2458_v39 = vunpack.i.l.bf16 %v2457_v62 }
 0x164   : > { %2215 = vmatpush1.bf16.msra.mxu1 %v2214_v2 }
 0x165   : > { %v481_v49 = vsel %vm469_vm3, %v2453_v24, %v2454_v20  ;;  %v656_v6 = vsel %vm469_vm3, %v2458_v39, %v2459_v35 }
 0x166   : > { %v2462_v50 = vpop.permute.xlu1 %2461  ;;  %v2467_v1 = vpop.permute.xlu0 %2466  ;;  %v2164_v3 = vpack.c.bf16 %v481_v49, %v479_v9 }
 0x167   : > { %v2464_v7 = vunpack.i.h.bf16 %v2462_v50  ;;  %v2463_v8 = vunpack.i.l.bf16 %v2462_v50  ;;  %v2469_v10 = vunpack.i.h.bf16 %v2467_v1  ;;  %v2468_v12 = vunpack.i.l.bf16 %v2467_v1 }
 0x168   : > { %2165 = vmatprep.subr.bf16.mxu0 %v2164_v3 }
 0x169   : > { %v478_v13 = vsel %vm469_vm3, %v2468_v12, %v2448_v63  ;;  %v480_v14 = vsel %vm469_vm3, %v2469_v10, %v2453_v24  ;;  %v658_v15 = vsel %vm469_vm3, %v2463_v8, %v2464_v7 }
 0x16a   : > { %v2472_v16 = vpop.permute.xlu1 %2471  ;;  %v2477_v17 = vpop.permute.xlu0 %2476  ;;  %v2166_v18 = vpack.c.bf16 %v480_v14, %v478_v13  ;;  %v2216_v19 = vpack.c.bf16 %v658_v15, %v656_v6 }
 0x16b   : > { %v2474_v21 = vunpack.i.h.bf16 %v2472_v16  ;;  %v2473_v22 = vunpack.i.l.bf16 %v2472_v16  ;;  %v2479_v23 = vunpack.i.h.bf16 %v2477_v17  ;;  %v2478_v25 = vunpack.i.l.bf16 %v2477_v17 }
 0x16c   : > { %2167 = vmatpush1.bf16.msra.mxu0 %v2166_v18  ;;  %2217 = vmatprep.subr.bf16.mxu1 %v2216_v19 }
 0x16d   : > { %v655_v26 = vsel %vm469_vm3, %v2473_v22, %v2458_v39  ;;  %v657_v27 = vsel %vm469_vm3, %v2474_v21, %v2463_v8  ;;  %v483_v31 = vsel %vm469_vm3, %v2478_v25, %v2479_v23 }
 0x16e   : > { %v2482_v28 = vpop.permute.xlu1 %2481  ;;  %v2487_v29 = vpop.permute.xlu0 %2486  ;;  %v2218_v30 = vpack.c.bf16 %v657_v27, %v655_v26 }
 0x16f   : > { %v2484_v32 = vunpack.i.h.bf16 %v2482_v28  ;;  %v2483_v33 = vunpack.i.l.bf16 %v2482_v28  ;;  %v2489_v34 = vunpack.i.h.bf16 %v2487_v29  ;;  %v2488_v36 = vunpack.i.l.bf16 %v2487_v29 }
 0x170   : > { %2219 = vmatpush1.bf16.msra.mxu1 %v2218_v30 }
 0x171   : > { %v485_v37 = vsel %vm469_vm3, %v2483_v33, %v2484_v32  ;;  %v660_v42 = vsel %vm469_vm3, %v2488_v36, %v2489_v34 }
 0x172   : > { %v2492_v38 = vpop.permute.xlu1 %2491  ;;  %v2497_v40 = vpop.permute.xlu0 %2496  ;;  %v2168_v41 = vpack.c.bf16 %v485_v37, %v483_v31 }
 0x173   : > { %v2494_v43 = vunpack.i.h.bf16 %v2492_v38  ;;  %v2493_v44 = vunpack.i.l.bf16 %v2492_v38  ;;  %v2499_v45 = vunpack.i.h.bf16 %v2497_v40  ;;  %v2498_v47 = vunpack.i.l.bf16 %v2497_v40 }
 0x174   : > { %2169 = vmatprep.subr.bf16.mxu0 %v2168_v41 }
 0x175   : > { %v482_v51 = vsel %vm469_vm3, %v2498_v47, %v2478_v25  ;;  %v484_v52 = vsel %vm469_vm3, %v2499_v45, %v2483_v33  ;;  %v662_v53 = vsel %vm469_vm3, %v2493_v44, %v2494_v43 }
 0x176   : > { %v2502_v54 = vpop.permute.xlu1 %2501  ;;  %v2507_v46 = vpop.permute.xlu0 %2506  ;;  %v2170_v48 = vpack.c.bf16 %v484_v52, %v482_v51  ;;  %v2220_v55 = vpack.c.bf16 %v662_v53, %v660_v42 }
 0x177   : > { %v2504_v56 = vunpack.i.h.bf16 %v2502_v54  ;;  %v2503_v11 = vunpack.i.l.bf16 %v2502_v54  ;;  %v2509_v57 = vunpack.i.h.bf16 %v2507_v46  ;;  %v2508_v58 = vunpack.i.l.bf16 %v2507_v46 }
 0x178   : > { %2171 = vmatpush1.bf16.msra.mxu0 %v2170_v48  ;;  %2221 = vmatprep.subr.bf16.mxu1 %v2220_v55 }
 0x179   : > { %v659_v59 = vsel %vm469_vm3, %v2503_v11, %v2488_v36  ;;  %v661_v60 = vsel %vm469_vm3, %v2504_v56, %v2493_v44  ;;  %v552_v9 = vsel %vm550_vm4, %v2508_v58, %v2509_v57 }
 0x17a   : > { %v2512_v61 = vpop.permute.xlu1 %2511  ;;  %v2517_v63 = vpop.permute.xlu0 %2516  ;;  %v2222_v0 = vpack.c.bf16 %v661_v60, %v659_v59 }
 0x17b   : > { %v2514_v4 = vunpack.i.h.bf16 %v2512_v61  ;;  %v2513_v5 = vunpack.i.l.bf16 %v2512_v61  ;;  %v2519_v62 = vunpack.i.h.bf16 %v2517_v63  ;;  %v2518_v2 = vunpack.i.l.bf16 %v2517_v63 }
 0x17c   : > { %2223 = vmatpush1.bf16.msra.mxu1 %v2222_v0 }
 0x17d   : > { %v554_v20 = vsel %vm550_vm4, %v2513_v5, %v2514_v4  ;;  %v728_v8 = vsel %vm550_vm4, %v2518_v2, %v2519_v62 }
 0x17e   : > { %v2522_v24 = vpop.permute.xlu1 %2521  ;;  %v2527_v35 = vpop.permute.xlu0 %2526  ;;  %v2172_v39 = vpack.c.bf16 %v554_v20, %v552_v9 }
 0x17f   : > { %v2524_v49 = vunpack.i.h.bf16 %v2522_v24  ;;  %v2523_v50 = vunpack.i.l.bf16 %v2522_v24  ;;  %v2529_v1 = vunpack.i.h.bf16 %v2527_v35  ;;  %v2528_v3 = vunpack.i.l.bf16 %v2527_v35 }
 0x180   : > { %2173 = vmatprep.subr.bf16.mxu0 %v2172_v39 }
 0x181   : > { %v551_v6 = vsel %vm550_vm4, %v2528_v3, %v2508_v58  ;;  %v553_v7 = vsel %vm550_vm4, %v2529_v1, %v2513_v5  ;;  %v730_v10 = vsel %vm550_vm4, %v2523_v50, %v2524_v49 }
 0x182   : > { %v2532_v12 = vpop.permute.xlu1 %2531  ;;  %v2537_v13 = vpop.permute.xlu0 %2536  ;;  %v2174_v14 = vpack.c.bf16 %v553_v7, %v551_v6  ;;  %v2224_v15 = vpack.c.bf16 %v730_v10, %v728_v8 }
 0x183   : > { %v2534_v16 = vunpack.i.h.bf16 %v2532_v12  ;;  %v2533_v17 = vunpack.i.l.bf16 %v2532_v12  ;;  %v2539_v18 = vunpack.i.h.bf16 %v2537_v13  ;;  %v2538_v19 = vunpack.i.l.bf16 %v2537_v13 }
 0x184   : > { %2175 = vmatpush1.bf16.msra.mxu0 %v2174_v14  ;;  %2225 = vmatprep.subr.bf16.mxu1 %v2224_v15 }
 0x185   : > { %v727_v21 = vsel %vm550_vm4, %v2533_v17, %v2518_v2  ;;  %v729_v22 = vsel %vm550_vm4, %v2534_v16, %v2523_v50  ;;  %v556_v31 = vsel %vm550_vm4, %v2538_v19, %v2539_v18 }
 0x186   : > { %v2542_v23 = vpop.permute.xlu1 %2541  ;;  %v2547_v25 = vpop.permute.xlu0 %2546  ;;  %v2226_v26 = vpack.c.bf16 %v729_v22, %v727_v21  ;;  %v759_v22 = vlaneseq }
 0x187   : > { %v2544_v27 = vunpack.i.h.bf16 %v2542_v23  ;;  %v2543_v28 = vunpack.i.l.bf16 %v2542_v23  ;;  %v2549_v29 = vunpack.i.h.bf16 %v2547_v25  ;;  %v2548_v30 = vunpack.i.l.bf16 %v2547_v25 }
 0x188   : > { %2227 = vmatpush1.bf16.msra.mxu1 %v2226_v26 }
 0x189   : > { %v558_v32 = vsel %vm550_vm4, %v2543_v28, %v2544_v27  ;;  %v732_v44 = vsel %vm550_vm4, %v2548_v30, %v2549_v29 }
 0x18a   : > { %v2552_v33 = vpop.permute.xlu1 %2551  ;;  %v2557_v34 = vpop.permute.xlu0 %2556  ;;  %v2176_v36 = vpack.c.bf16 %v558_v32, %v556_v31 }
 0x18b   : > { %v2554_v37 = vunpack.i.h.bf16 %v2552_v33  ;;  %v2553_v38 = vunpack.i.l.bf16 %v2552_v33  ;;  %v2559_v40 = vunpack.i.h.bf16 %v2557_v34  ;;  %v2558_v41 = vunpack.i.l.bf16 %v2557_v34 }
 0x18c   : > { %2177 = vmatprep.subr.bf16.mxu0 %v2176_v36  ;;  %v760_v33 = vshrl.u32 %v759_v22, 7  ;;  %v828_v22 = vld [vmem:[#allocation5 + $0x120] sm:$0xff] }
 0x18d   : > { %v555_v42 = vsel %vm550_vm4, %v2558_v41, %v2538_v19  ;;  %v557_v43 = vsel %vm550_vm4, %v2559_v40, %v2543_v28  ;;  %v734_v45 = vsel %vm550_vm4, %v2553_v38, %v2554_v37 }
 0x18e   : > { %v2562_v47 = vpop.permute.xlu1 %2561  ;;  %v2567_v51 = vpop.permute.xlu0 %2566  ;;  %v2178_v52 = vpack.c.bf16 %v557_v43, %v555_v42  ;;  %v2228_v53 = vpack.c.bf16 %v734_v45, %v732_v44  ;;  %vm768_vm5 = vcmp.eq.s32.totalorder %v760_v33, 0  ;;  %v838_v33 = vld [vmem:[#allocation5 + $0x170] sm:$0xff] }
 0x18f   : > { %v2564_v54 = vunpack.i.h.bf16 %v2562_v47  ;;  %v2563_v46 = vunpack.i.l.bf16 %v2562_v47  ;;  %v2569_v48 = vunpack.i.h.bf16 %v2567_v51  ;;  %v2568_v55 = vunpack.i.l.bf16 %v2567_v51 }
 0x190   : > { %2179 = vmatpush1.bf16.msra.mxu0 %v2178_v52  ;;  %2229 = vmatprep.subr.bf16.mxu1 %v2228_v53  ;;  %v3018_v53 = vmov 1.0  }
 0x191   : > { %v731_v56 = vsel %vm550_vm4, %v2563_v46, %v2548_v30  ;;  %v733_v11 = vsel %vm550_vm4, %v2564_v54, %v2553_v38  ;;  %v560_v4 = vsel %vm550_vm4, %v2568_v55, %v2569_v48 }
 0x192   : > { %v2572_v57 = vpop.permute.xlu1 %2571  ;;  %v2577_v58 = vpop.permute.xlu0 %2576  ;;  %v2230_v59 = vpack.c.bf16 %v733_v11, %v731_v56  ;;  %v795_v56 = vld [vmem:[#allocation5 + $0x18] sm:$0xff]  ;;  %v794_v11 = vld [vmem:[#allocation5 + $0x10] sm:$0xff] }
 0x193   : > { %v2574_v60 = vunpack.i.h.bf16 %v2572_v57  ;;  %v2573_v61 = vunpack.i.l.bf16 %v2572_v57  ;;  %v2579_v63 = vunpack.i.h.bf16 %v2577_v58  ;;  %v2578_v0 = vunpack.i.l.bf16 %v2577_v58  ;;  %v797_v57 = vld [vmem:[#allocation5 + $0x28] sm:$0xff]  ;;  %v796_v58 = vld [vmem:[#allocation5 + $0x20] sm:$0xff] }
 0x194   : > { %2231 = vmatpush1.bf16.msra.mxu1 %v2230_v59  ;;  %v799_v59 = vld [vmem:[#allocation5 + $0x38] sm:$0xff] }
 0x195   : > { %v562_v5 = vsel %vm550_vm4, %v2573_v61, %v2574_v60  ;;  %v736_v1 = vsel %vm550_vm4, %v2578_v0, %v2579_v63  ;;  %v798_v60 = vld [vmem:[#allocation5 + $0x30] sm:$0xff]  ;;  %v800_v63 = vld [vmem:[#allocation5 + $0x40] sm:$0xff] }
 0x196   : > { %v2582_v62 = vpop.permute.xlu1 %2581  ;;  %v2587_v2 = vpop.permute.xlu0 %2586  ;;  %v2180_v9 = vpack.c.bf16 %v562_v5, %v560_v4  ;;  %v802_v4 = vld [vmem:[#allocation5 + $0x50] sm:$0xff]  ;;  %v805_v5 = vld [vmem:[#allocation5 + $0x68] sm:$0xff] }
 0x197   : > { %v2584_v20 = vunpack.i.h.bf16 %v2582_v62  ;;  %v2583_v24 = vunpack.i.l.bf16 %v2582_v62  ;;  %v2589_v35 = vunpack.i.h.bf16 %v2587_v2  ;;  %v2588_v39 = vunpack.i.l.bf16 %v2587_v2  ;;  %v804_v62 = vld [vmem:[#allocation5 + $0x60] sm:$0xff]  ;;  %v807_v2 = vld [vmem:[#allocation5 + $0x78] sm:$0xff] }
 0x198   : > { %2181 = vmatprep.subr.bf16.mxu0 %v2180_v9  ;;  %v806_v9 = vld [vmem:[#allocation5 + $0x70] sm:$0xff] }
 0x199   : > { %v559_v49 = vsel %vm550_vm4, %v2588_v39, %v2568_v55  ;;  %v561_v50 = vsel %vm550_vm4, %v2589_v35, %v2573_v61  ;;  %v738_v3 = vsel %vm550_vm4, %v2583_v24, %v2584_v20  ;;  %v792_v55 = vld [vmem:[#allocation5] sm:$0xff]  ;;  %v801_v61 = vld [vmem:[#allocation5 + $0x48] sm:$0xff]  ;;  %v811_v35 = vld [vmem:[#allocation5 + $0x98] sm:$0xff] }
 0x19a   : > { %v2592_v6 = vpop.permute.xlu1 %2591  ;;  %v2597_v7 = vpop.permute.xlu0 %2596  ;;  %v2182_v8 = vpack.c.bf16 %v561_v50, %v559_v49  ;;  %v2232_v10 = vpack.c.bf16 %v738_v3, %v736_v1  ;;  %v809_v20 = vld [vmem:[#allocation5 + $0x88] sm:$0xff]  ;;  %v810_v39 = vld [vmem:[#allocation5 + $0x90] sm:$0xff]  ;;  %v812_v50 = vld [vmem:[#allocation5 + $0xa0] sm:$0xff] }
 0x19b   : > { %v2594_v12 = vunpack.i.h.bf16 %v2592_v6  ;;  %v2593_v13 = vunpack.i.l.bf16 %v2592_v6  ;;  %v2599_v14 = vunpack.i.h.bf16 %v2597_v7  ;;  %v2598_v15 = vunpack.i.l.bf16 %v2597_v7  ;;  %v813_v49 = vld [vmem:[#allocation5 + $0xa8] sm:$0xff]  ;;  %v815_v1 = vld [vmem:[#allocation5 + $0xb8] sm:$0xff]  ;;  %v814_v3 = vld [vmem:[#allocation5 + $0xb0] sm:$0xff] }
 0x19c   : > { %2183 = vmatpush1.bf16.msra.mxu0 %v2182_v8  ;;  %2233 = vmatprep.subr.bf16.mxu1 %v2232_v10  ;;  %v817_v6 = vld [vmem:[#allocation5 + $0xc8] sm:$0xff]  ;;  %v816_v7 = vld [vmem:[#allocation5 + $0xc0] sm:$0xff]  ;;  %v819_v8 = vld [vmem:[#allocation5 + $0xd8] sm:$0xff] }
 0x19d   : > { %v735_v16 = vsel %vm550_vm4, %v2593_v13, %v2578_v0  ;;  %v737_v17 = vsel %vm550_vm4, %v2594_v12, %v2583_v24  ;;  %v564_v28 = vsel %vm550_vm4, %v2598_v15, %v2599_v14  ;;  %v803_v0 = vld [vmem:[#allocation5 + $0x58] sm:$0xff]  ;;  %v808_v24 = vld [vmem:[#allocation5 + $0x80] sm:$0xff]  ;;  %v818_v10 = vld [vmem:[#allocation5 + $0xd0] sm:$0xff] }
 0x19e   : > { %v2602_v18 = vpop.permute.xlu1 %2601  ;;  %v2607_v19 = vpop.permute.xlu0 %2606  ;;  %v2234_v21 = vpack.c.bf16 %v737_v17, %v735_v16  ;;  %v821_v12 = vld [vmem:[#allocation5 + $0xe8] sm:$0xff]  ;;  %v820_v13 = vld [vmem:[#allocation5 + $0xe0] sm:$0xff]  ;;  %v823_v14 = vld [vmem:[#allocation5 + $0xf8] sm:$0xff] }
 0x19f   : > { %v2604_v23 = vunpack.i.h.bf16 %v2602_v18  ;;  %v2603_v25 = vunpack.i.l.bf16 %v2602_v18  ;;  %v2609_v26 = vunpack.i.h.bf16 %v2607_v19  ;;  %v2608_v27 = vunpack.i.l.bf16 %v2607_v19  ;;  %v825_v16 = vld [vmem:[#allocation5 + $0x108] sm:$0xff]  ;;  %v824_v17 = vld [vmem:[#allocation5 + $0x100] sm:$0xff]  ;;  %v827_v18 = vld [vmem:[#allocation5 + $0x118] sm:$0xff] }
 0x1a0   : > { %2235 = vmatpush1.bf16.msra.mxu1 %v2234_v21  ;;  %v826_v19 = vld [vmem:[#allocation5 + $0x110] sm:$0xff]  ;;  %v829_v21 = vld [vmem:[#allocation5 + $0x128] sm:$0xff] }
 0x1a1   : > { %v566_v29 = vsel %vm550_vm4, %v2603_v25, %v2604_v23  ;;  %v740_v42 = vsel %vm550_vm4, %v2608_v27, %v2609_v26  ;;  %v831_v23 = vld [vmem:[#allocation5 + $0x138] sm:$0xff]  ;;  %v833_v26 = vld [vmem:[#allocation5 + $0x148] sm:$0xff] }
 0x1a2   : > { %v2612_v30 = vpop.permute.xlu1 %2611  ;;  %v2617_v31 = vpop.permute.xlu0 %2616  ;;  %v2184_v32 = vpack.c.bf16 %v566_v29, %v564_v28  ;;  %v835_v28 = vld [vmem:[#allocation5 + $0x158] sm:$0xff]  ;;  %v834_v29 = vld [vmem:[#allocation5 + $0x150] sm:$0xff] }
 0x1a3   : > { %v2614_v34 = vunpack.i.h.bf16 %v2612_v30  ;;  %v2613_v36 = vunpack.i.l.bf16 %v2612_v30  ;;  %v2619_v37 = vunpack.i.h.bf16 %v2617_v31  ;;  %v2618_v38 = vunpack.i.l.bf16 %v2617_v31  ;;  %v837_v30 = vld [vmem:[#allocation5 + $0x168] sm:$0xff]  ;;  %v836_v31 = vld [vmem:[#allocation5 + $0x160] sm:$0xff] }
 0x1a4   : > { %2185 = vmatprep.subr.bf16.mxu0 %v2184_v32  ;;  %v839_v32 = vld [vmem:[#allocation5 + $0x178] sm:$0xff] }
 0x1a5   : > { %v563_v40 = vsel %vm550_vm4, %v2618_v38, %v2598_v15  ;;  %v565_v41 = vsel %vm550_vm4, %v2619_v37, %v2603_v25  ;;  %v742_v43 = vsel %vm550_vm4, %v2613_v36, %v2614_v34  ;;  %v822_v15 = vld [vmem:[#allocation5 + $0xf0] sm:$0xff]  ;;  %v841_v34 = vld [vmem:[#allocation5 + $0x188] sm:$0xff]  ;;  %v843_v37 = vld [vmem:[#allocation5 + $0x198] sm:$0xff] }
 0x1a6   : > { %v2622_v44 = vpop.permute.xlu1 %2621  ;;  %v2186_v45 = vpack.c.bf16 %v565_v41, %v563_v40  ;;  %v2236_v47 = vpack.c.bf16 %v742_v43, %v740_v42  ;;  %v830_v25 = vld [vmem:[#allocation5 + $0x130] sm:$0xff]  ;;  %v845_v40 = vld [vmem:[#allocation5 + $0x1a8] sm:$0xff]  ;;  %v844_v41 = vld [vmem:[#allocation5 + $0x1a0] sm:$0xff] }
 0x1a7   : > { %v2624_v51 = vunpack.i.h.bf16 %v2622_v44  ;;  %v2623_v52 = vunpack.i.l.bf16 %v2622_v44  ;;  %v842_v38 = vld [vmem:[#allocation5 + $0x190] sm:$0xff]  ;;  %v847_v42 = vld [vmem:[#allocation5 + $0x1b8] sm:$0xff]  ;;  %v849_v44 = vld [vmem:[#allocation5 + $0x1c8] sm:$0xff] }
 0x1a8   : > { %2187 = vmatpush1.bf16.msra.mxu0 %v2186_v45  ;;  %2237 = vmatprep.subr.bf16.mxu1 %v2236_v47  ;;  %v846_v43 = vld [vmem:[#allocation5 + $0x1b0] sm:$0xff]  ;;  %v848_v45 = vld [vmem:[#allocation5 + $0x1c0] sm:$0xff]  ;;  %v851_v47 = vld [vmem:[#allocation5 + $0x1d8] sm:$0xff] }
 0x1a9   : > { %2010 = vmatprep.subr.msk.mxu0 %vm768_vm5, %v3018_v53  ;;  %v739_v54 = vsel %vm550_vm4, %v2623_v52, %v2608_v27  ;;  %v741_v46 = vsel %vm550_vm4, %v2624_v51, %v2613_v36  ;;  %v832_v27 = vld [vmem:[#allocation5 + $0x140] sm:$0xff]  ;;  %v850_v51 = vld [vmem:[#allocation5 + $0x1d0] sm:$0xff]  ;;  %v853_v52 = vld [vmem:[#allocation5 + $0x1e8] sm:$0xff] }
 0x1aa   : > { %v2238_v48 = vpack.c.bf16 %v741_v46, %v739_v54  ;;  %v840_v36 = vld [vmem:[#allocation5 + $0x180] sm:$0xff]  ;;  %v855_v54 = vld [vmem:[#allocation5 + $0x1f8] sm:$0xff]  ;;  %v854_v46 = vld [vmem:[#allocation5 + $0x1f0] sm:$0xff] }
 0x1ac   : > { %2011 = vmatpush1.msk.msra.mxu0 %vm768_vm5, %v3018_v53  ;;  %2239 = vmatpush1.bf16.msra.mxu1 %v2238_v48 }
 0x1ad   : > { %921 = vmatmul.mubr.f32.vlgmr.msra.gmra.mrb[0].mxu0 %v792_v55  ;;  %2028 = vmatprep.subr.msk.mxu1 %vm768_vm5, %v3018_v53 }
 0x1ae   : > { %926 = vmatprep.mubr.f32.mxu0 %v795_v56 }
 0x1b0   : > { %2029 = vmatpush1.msk.msra.mxu1 %vm768_vm5, %v3018_v53  ;;  %v852_v53 = vld [vmem:[#allocation5 + $0x1e0] sm:$0xff] }
 0x1b1   : > { %927 = vmatmul.mubr.f32.gmra.mrb[2].mxu0 %v794_v11  ;;  %1178 = vmatmul.mubr.f32.vlgmr.msra.gmra.mrb[0].mxu1 %v792_v55 }
 0x1b2   : > { %932 = vmatprep.mubr.f32.mxu0 %v797_v57  ;;  %1183 = vmatprep.mubr.f32.mxu1 %v795_v56 }
 0x1b5   : > { %933 = vmatmul.mubr.f32.gmra.mrb[4].mxu0 %v796_v58  ;;  %1184 = vmatmul.mubr.f32.gmra.mrb[2].mxu1 %v794_v11 }
 0x1b6   : > { %938 = vmatprep.mubr.f32.mxu0 %v799_v59  ;;  %1189 = vmatprep.mubr.f32.mxu1 %v797_v57 }
 0x1b9   : > { %939 = vmatmul.mubr.f32.gmra.mrb[6].mxu0 %v798_v60  ;;  %1190 = vmatmul.mubr.f32.gmra.mrb[4].mxu1 %v796_v58 }
 0x1ba   : > { %944 = vmatprep.mubr.f32.mxu0 %v801_v61  ;;  %1195 = vmatprep.mubr.f32.mxu1 %v799_v59 }
 0x1bd   : > { %945 = vmatmul.mubr.f32.gmra.mrb[8].mxu0 %v800_v63  ;;  %1196 = vmatmul.mubr.f32.gmra.mrb[6].mxu1 %v798_v60 }
 0x1be   : > { %950 = vmatprep.mubr.f32.mxu0 %v803_v0  ;;  %1201 = vmatprep.mubr.f32.mxu1 %v801_v61 }
 0x1c1   : > { %951 = vmatmul.mubr.f32.gmra.mrb[10].mxu0 %v802_v4  ;;  %1202 = vmatmul.mubr.f32.gmra.mrb[8].mxu1 %v800_v63 }
 0x1c2   : > { %956 = vmatprep.mubr.f32.mxu0 %v805_v5  ;;  %1207 = vmatprep.mubr.f32.mxu1 %v803_v0 }
 0x1c5   : > { %957 = vmatmul.mubr.f32.gmra.mrb[12].mxu0 %v804_v62  ;;  %1208 = vmatmul.mubr.f32.gmra.mrb[10].mxu1 %v802_v4 }
 0x1c6   : > { %962 = vmatprep.mubr.f32.mxu0 %v807_v2  ;;  %1213 = vmatprep.mubr.f32.mxu1 %v805_v5 }
 0x1c9   : > { %963 = vmatmul.mubr.f32.gmra.mrb[14].mxu0 %v806_v9  ;;  %1214 = vmatmul.mubr.f32.gmra.mrb[12].mxu1 %v804_v62 }
 0x1ca   : > { %968 = vmatprep.mubr.f32.mxu0 %v809_v20  ;;  %1219 = vmatprep.mubr.f32.mxu1 %v807_v2 }
 0x1cd   : > { %969 = vmatmul.mubr.f32.gmra.mrb[16].mxu0 %v808_v24  ;;  %1220 = vmatmul.mubr.f32.gmra.mrb[14].mxu1 %v806_v9 }
 0x1ce   : > { %974 = vmatprep.mubr.f32.mxu0 %v811_v35  ;;  %1225 = vmatprep.mubr.f32.mxu1 %v809_v20 }
 0x1d1   : > { %975 = vmatmul.mubr.f32.gmra.mrb[18].mxu0 %v810_v39  ;;  %1226 = vmatmul.mubr.f32.gmra.mrb[16].mxu1 %v808_v24 }
 0x1d2   : > { %980 = vmatprep.mubr.f32.mxu0 %v813_v49  ;;  %1231 = vmatprep.mubr.f32.mxu1 %v811_v35 }
 0x1d5   : > { %981 = vmatmul.mubr.f32.gmra.mrb[20].mxu0 %v812_v50  ;;  %1232 = vmatmul.mubr.f32.gmra.mrb[18].mxu1 %v810_v39 }
 0x1d6   : > { %986 = vmatprep.mubr.f32.mxu0 %v815_v1  ;;  %1237 = vmatprep.mubr.f32.mxu1 %v813_v49 }
 0x1d9   : > { %987 = vmatmul.mubr.f32.gmra.mrb[22].mxu0 %v814_v3  ;;  %1238 = vmatmul.mubr.f32.gmra.mrb[20].mxu1 %v812_v50 }
 0x1da   : > { %992 = vmatprep.mubr.f32.mxu0 %v817_v6  ;;  %1243 = vmatprep.mubr.f32.mxu1 %v815_v1 }
 0x1dd   : > { %993 = vmatmul.mubr.f32.gmra.mrb[24].mxu0 %v816_v7  ;;  %1244 = vmatmul.mubr.f32.gmra.mrb[22].mxu1 %v814_v3 }
 0x1de   : > { %998 = vmatprep.mubr.f32.mxu0 %v819_v8  ;;  %1249 = vmatprep.mubr.f32.mxu1 %v817_v6 }
 0x1e1   : > { %999 = vmatmul.mubr.f32.gmra.mrb[26].mxu0 %v818_v10  ;;  %1250 = vmatmul.mubr.f32.gmra.mrb[24].mxu1 %v816_v7 }
 0x1e2   : > { %1004 = vmatprep.mubr.f32.mxu0 %v821_v12  ;;  %1255 = vmatprep.mubr.f32.mxu1 %v819_v8 }
 0x1e5   : > { %1005 = vmatmul.mubr.f32.gmra.mrb[28].mxu0 %v820_v13  ;;  %1256 = vmatmul.mubr.f32.gmra.mrb[26].mxu1 %v818_v10 }
 0x1e6   : > { %1010 = vmatprep.mubr.f32.mxu0 %v823_v14  ;;  %1261 = vmatprep.mubr.f32.mxu1 %v821_v12 }
 0x1e9   : > { %1011 = vmatmul.mubr.f32.gmra.mrb[30].mxu0 %v822_v15  ;;  %1262 = vmatmul.mubr.f32.gmra.mrb[28].mxu1 %v820_v13 }
 0x1ea   : > { %1016 = vmatprep.mubr.f32.mxu0 %v825_v16  ;;  %1267 = vmatprep.mubr.f32.mxu1 %v823_v14 }
 0x1ed   : > { %1017 = vmatmul.mubr.f32.gmra.mrb[32].mxu0 %v824_v17  ;;  %1268 = vmatmul.mubr.f32.gmra.mrb[30].mxu1 %v822_v15 }
 0x1ee   : > { %1022 = vmatprep.mubr.f32.mxu0 %v827_v18  ;;  %1273 = vmatprep.mubr.f32.mxu1 %v825_v16 }
 0x1f1   : > { %1023 = vmatmul.mubr.f32.gmra.mrb[34].mxu0 %v826_v19  ;;  %1274 = vmatmul.mubr.f32.gmra.mrb[32].mxu1 %v824_v17 }
 0x1f2   : > { %1028 = vmatprep.mubr.f32.mxu0 %v829_v21  ;;  %1279 = vmatprep.mubr.f32.mxu1 %v827_v18 }
 0x1f5   : > { %1029 = vmatmul.mubr.f32.gmra.mrb[36].mxu0 %v828_v22  ;;  %1280 = vmatmul.mubr.f32.gmra.mrb[34].mxu1 %v826_v19 }
 0x1f6   : > { %1034 = vmatprep.mubr.f32.mxu0 %v831_v23  ;;  %1285 = vmatprep.mubr.f32.mxu1 %v829_v21 }
 0x1f9   : > { %1035 = vmatmul.mubr.f32.gmra.mrb[38].mxu0 %v830_v25  ;;  %1286 = vmatmul.mubr.f32.gmra.mrb[36].mxu1 %v828_v22 }
 0x1fa   : > { %1040 = vmatprep.mubr.f32.mxu0 %v833_v26  ;;  %1291 = vmatprep.mubr.f32.mxu1 %v831_v23 }
 0x1fd   : > { %1041 = vmatmul.mubr.f32.gmra.mrb[40].mxu0 %v832_v27  ;;  %1292 = vmatmul.mubr.f32.gmra.mrb[38].mxu1 %v830_v25 }
 0x1fe   : > { %1046 = vmatprep.mubr.f32.mxu0 %v835_v28  ;;  %1297 = vmatprep.mubr.f32.mxu1 %v833_v26 }
 0x201   : > { %1047 = vmatmul.mubr.f32.gmra.mrb[42].mxu0 %v834_v29  ;;  %1298 = vmatmul.mubr.f32.gmra.mrb[40].mxu1 %v832_v27 }
 0x202   : > { %1052 = vmatprep.mubr.f32.mxu0 %v837_v30  ;;  %1303 = vmatprep.mubr.f32.mxu1 %v835_v28 }
 0x205   : > { %1053 = vmatmul.mubr.f32.gmra.mrb[44].mxu0 %v836_v31  ;;  %1304 = vmatmul.mubr.f32.gmra.mrb[42].mxu1 %v834_v29 }
 0x206   : > { %1058 = vmatprep.mubr.f32.mxu0 %v839_v32  ;;  %1309 = vmatprep.mubr.f32.mxu1 %v837_v30 }
 0x209   : > { %1059 = vmatmul.mubr.f32.gmra.mrb[46].mxu0 %v838_v33  ;;  %1310 = vmatmul.mubr.f32.gmra.mrb[44].mxu1 %v836_v31 }
 0x20a   : > { %1064 = vmatprep.mubr.f32.mxu0 %v841_v34  ;;  %1315 = vmatprep.mubr.f32.mxu1 %v839_v32 }
 0x20d   : > { %1065 = vmatmul.mubr.f32.gmra.mrb[48].mxu0 %v840_v36  ;;  %1316 = vmatmul.mubr.f32.gmra.mrb[46].mxu1 %v838_v33 }
 0x20e   : > { %1070 = vmatprep.mubr.f32.mxu0 %v843_v37  ;;  %1321 = vmatprep.mubr.f32.mxu1 %v841_v34 }
 0x211   : > { %1071 = vmatmul.mubr.f32.gmra.mrb[50].mxu0 %v842_v38  ;;  %1322 = vmatmul.mubr.f32.gmra.mrb[48].mxu1 %v840_v36 }
 0x212   : > { %1076 = vmatprep.mubr.f32.mxu0 %v845_v40  ;;  %1327 = vmatprep.mubr.f32.mxu1 %v843_v37 }
 0x215   : > { %1077 = vmatmul.mubr.f32.gmra.mrb[52].mxu0 %v844_v41  ;;  %1328 = vmatmul.mubr.f32.gmra.mrb[50].mxu1 %v842_v38 }
 0x216   : > { %1082 = vmatprep.mubr.f32.mxu0 %v847_v42  ;;  %1333 = vmatprep.mubr.f32.mxu1 %v845_v40 }
 0x219   : > { %1083 = vmatmul.mubr.f32.gmra.mrb[54].mxu0 %v846_v43  ;;  %1334 = vmatmul.mubr.f32.gmra.mrb[52].mxu1 %v844_v41 }
 0x21a   : > { %1088 = vmatprep.mubr.f32.mxu0 %v849_v44  ;;  %1339 = vmatprep.mubr.f32.mxu1 %v847_v42 }
 0x21d   : > { %1089 = vmatmul.mubr.f32.gmra.mrb[56].mxu0 %v848_v45  ;;  %1340 = vmatmul.mubr.f32.gmra.mrb[54].mxu1 %v846_v43 }
 0x21e   : > { %1094 = vmatprep.mubr.f32.mxu0 %v851_v47  ;;  %1345 = vmatprep.mubr.f32.mxu1 %v849_v44 }
 0x221   : > { %1095 = vmatmul.mubr.f32.gmra.mrb[58].mxu0 %v850_v51  ;;  %1346 = vmatmul.mubr.f32.gmra.mrb[56].mxu1 %v848_v45 }
 0x222   : > { %1100 = vmatprep.mubr.f32.mxu0 %v853_v52  ;;  %1351 = vmatprep.mubr.f32.mxu1 %v851_v47 }
 0x225   : > { %1101 = vmatmul.mubr.f32.gmra.mrb[60].mxu0 %v852_v53  ;;  %1352 = vmatmul.mubr.f32.gmra.mrb[58].mxu1 %v850_v51 }
 0x226   : > { %1106 = vmatprep.mubr.f32.mxu0 %v855_v54  ;;  %1357 = vmatprep.mubr.f32.mxu1 %v853_v52 }
 0x229   : > { %1107 = vmatmul.mubr.f32.gmra.mrb[62].mxu0 %v854_v46  ;;  %1358 = vmatmul.mubr.f32.gmra.mrb[60].mxu1 %v852_v53 }
 0x22a   : > { %1363 = vmatprep.mubr.f32.mxu1 %v855_v54 }
 0x22d   : > { %1364 = vmatmul.mubr.f32.gmra.mrb[62].mxu1 %v854_v46 }
 0x280   : > { %v3467_v48 = vpop.f32.mrb[0].mxu0 }
 0x281   : > { %v3469_v55 = vpop.f32.mrb[1].mxu0 }
 0x284   : > { %v3471_v56 = vpop.f32.mrb[0].mxu1  ;;  %v3473_v11 = vpop.f32.mrb[2].mxu0 }
 0x285   : > { %v3475_v57 = vpop.f32.mrb[1].mxu1  ;;  %v3477_v58 = vpop.f32.mrb[3].mxu0 }
 0x288   : > { %v3479_v59 = vpop.f32.mrb[2].mxu1  ;;  %v3481_v60 = vpop.f32.mrb[4].mxu0 }
 0x289   : > { %v3483_v61 = vpop.f32.mrb[3].mxu1  ;;  %v3485_v63 = vpop.f32.mrb[5].mxu0 }
 0x28c   : > { %v3487_v0 = vpop.f32.mrb[4].mxu1  ;;  %v3489_v4 = vpop.f32.mrb[6].mxu0 }
 0x28d   : > { %v3491_v5 = vpop.f32.mrb[5].mxu1  ;;  %v3493_v62 = vpop.f32.mrb[7].mxu0 }
 0x290   : > { %v3495_v2 = vpop.f32.mrb[6].mxu1  ;;  %v3497_v9 = vpop.f32.mrb[8].mxu0 }
 0x291   : > { %v3499_v20 = vpop.f32.mrb[7].mxu1  ;;  %v3501_v24 = vpop.f32.mrb[9].mxu0 }
 0x294   : > { %v3503_v35 = vpop.f32.mrb[8].mxu1  ;;  %v3505_v39 = vpop.f32.mrb[10].mxu0 }
 0x295   : > { %v3507_v49 = vpop.f32.mrb[9].mxu1  ;;  %v3509_v50 = vpop.f32.mrb[11].mxu0 }
 0x298   : > { %v3511_v1 = vpop.f32.mrb[10].mxu1  ;;  %v3513_v3 = vpop.f32.mrb[12].mxu0 }
 0x299   : > { %v3515_v6 = vpop.f32.mrb[11].mxu1  ;;  %v3517_v7 = vpop.f32.mrb[13].mxu0 }
 0x29c   : > { %v3519_v8 = vpop.f32.mrb[12].mxu1  ;;  %v3521_v10 = vpop.f32.mrb[14].mxu0 }
 0x29d   : > { %v3523_v12 = vpop.f32.mrb[13].mxu1  ;;  %v3525_v13 = vpop.f32.mrb[15].mxu0 }
 0x2a0   : > { %v3527_v14 = vpop.f32.mrb[14].mxu1  ;;  %v3529_v15 = vpop.f32.mrb[16].mxu0 }
 0x2a1   : > { %v3531_v16 = vpop.f32.mrb[15].mxu1  ;;  %v3533_v17 = vpop.f32.mrb[17].mxu0 }
 0x2a4   : > { %v3535_v18 = vpop.f32.mrb[16].mxu1  ;;  %v3537_v19 = vpop.f32.mrb[18].mxu0 }
 0x2a5   : > { %v3539_v21 = vpop.f32.mrb[17].mxu1  ;;  %v3541_v22 = vpop.f32.mrb[19].mxu0 }
 0x2a6   : > { %3928 = vst [vmem:[#allocation11_spill] sm:$0xff] %v3539_v21 }
 0x2a8   : > { %v3543_v23 = vpop.f32.mrb[18].mxu1  ;;  %v3545_v25 = vpop.f32.mrb[20].mxu0 }
 0x2a9   : > { %3929 = vst [vmem:[#allocation12_spill] sm:$0xff] %v3543_v23  ;;  %3930 = vst [vmem:[#allocation13_spill] sm:$0xff] %v3545_v25  ;;  %v3547_v26 = vpop.f32.mrb[19].mxu1  ;;  %v3549_v27 = vpop.f32.mrb[21].mxu0 }
 0x2aa   : > { %3931 = vst [vmem:[#allocation14_spill] sm:$0xff] %v3547_v26  ;;  %3932 = vst [vmem:[#allocation15_spill] sm:$0xff] %v3549_v27 }
 0x2ac   : > { %v3551_v28 = vpop.f32.mrb[20].mxu1  ;;  %v3553_v29 = vpop.f32.mrb[22].mxu0 }
 0x2ad   : > { %3933 = vst [vmem:[#allocation16_spill] sm:$0xff] %v3551_v28  ;;  %3934 = vst [vmem:[#allocation17_spill] sm:$0xff] %v3553_v29  ;;  %v3555_v30 = vpop.f32.mrb[21].mxu1  ;;  %v3557_v31 = vpop.f32.mrb[23].mxu0 }
 0x2ae   : > { %3935 = vst [vmem:[#allocation18_spill] sm:$0xff] %v3555_v30  ;;  %3936 = vst [vmem:[#allocation19_spill] sm:$0xff] %v3557_v31 }
 0x2b0   : > { %v3559_v32 = vpop.f32.mrb[22].mxu1  ;;  %v3561_v33 = vpop.f32.mrb[24].mxu0 }
 0x2b1   : > { %3937 = vst [vmem:[#allocation20_spill] sm:$0xff] %v3559_v32  ;;  %3938 = vst [vmem:[#allocation21_spill] sm:$0xff] %v3561_v33  ;;  %v3563_v34 = vpop.f32.mrb[23].mxu1  ;;  %v3565_v36 = vpop.f32.mrb[25].mxu0 }
 0x2b2   : > { %3939 = vst [vmem:[#allocation22_spill] sm:$0xff] %v3563_v34  ;;  %3940 = vst [vmem:[#allocation23_spill] sm:$0xff] %v3565_v36 }
 0x2b4   : > { %v3567_v37 = vpop.f32.mrb[24].mxu1  ;;  %v3569_v38 = vpop.f32.mrb[26].mxu0 }
 0x2b5   : > { %3941 = vst [vmem:[#allocation24_spill] sm:$0xff] %v3567_v37  ;;  %3942 = vst [vmem:[#allocation25_spill] sm:$0xff] %v3569_v38  ;;  %v3571_v40 = vpop.f32.mrb[25].mxu1  ;;  %v3573_v41 = vpop.f32.mrb[27].mxu0 }
 0x2b6   : > { %3943 = vst [vmem:[#allocation26_spill] sm:$0xff] %v3571_v40  ;;  %3944 = vst [vmem:[#allocation27_spill] sm:$0xff] %v3573_v41 }
 0x2b8   : > { %v3575_v42 = vpop.f32.mrb[26].mxu1  ;;  %v3577_v43 = vpop.f32.mrb[28].mxu0 }
 0x2b9   : > { %3945 = vst [vmem:[#allocation28_spill] sm:$0xff] %v3575_v42  ;;  %3946 = vst [vmem:[#allocation29_spill] sm:$0xff] %v3577_v43  ;;  %v3579_v44 = vpop.f32.mrb[27].mxu1  ;;  %v3581_v45 = vpop.f32.mrb[29].mxu0 }
 0x2ba   : > { %3947 = vst [vmem:[#allocation30_spill] sm:$0xff] %v3579_v44  ;;  %3948 = vst [vmem:[#allocation31_spill] sm:$0xff] %v3581_v45 }
 0x2bc   : > { %v3583_v47 = vpop.f32.mrb[28].mxu1  ;;  %v3585_v51 = vpop.f32.mrb[30].mxu0 }
 0x2bd   : > { %3949 = vst [vmem:[#allocation32_spill] sm:$0xff] %v3583_v47  ;;  %3950 = vst [vmem:[#allocation33_spill] sm:$0xff] %v3585_v51  ;;  %v3587_v52 = vpop.f32.mrb[29].mxu1  ;;  %v3589_v53 = vpop.f32.mrb[31].mxu0 }
 0x2be   : > { %3951 = vst [vmem:[#allocation34_spill] sm:$0xff] %v3587_v52  ;;  %3952 = vst [vmem:[#allocation35_spill] sm:$0xff] %v3589_v53 }
 0x2c0   : > { %v1018_v54 = vpop.f32.mrb[32].mxu0  ;;  %v3591_v46 = vpop.f32.mrb[30].mxu1 }
 0x2c1   : > { %3953 = vst [vmem:[#allocation36_spill] sm:$0xff] %v3591_v46  ;;  %v2030_v40 = vmul.f32 -1.442695, %v1018_v54  ;;  %v1020_v41 = vpop.f32.mrb[33].mxu0  ;;  %v3593_v42 = vpop.f32.mrb[31].mxu1 }
 0x2c2   : > { %3954 = vst [vmem:[#allocation37_spill] sm:$0xff] %v3593_v42  ;;  %v2031_v43 = vmul.f32 -1.442695, %v1020_v41 }
 0x2c3   : > { %2625 = vpow2.f32 %v2030_v40 }
 0x2c4   : > { %2627 = vpow2.f32 %v2031_v43  ;;  %v1024_v44 = vpop.f32.mrb[34].mxu0  ;;  %v1275_v45 = vpop.f32.mrb[32].mxu1 }
 0x2c5   : > { %v2034_v37 = vmul.f32 -1.442695, %v1024_v44  ;;  %v2032_v47 = vmul.f32 -1.442695, %v1275_v45  ;;  %v1026_v38 = vpop.f32.mrb[35].mxu0  ;;  %v1277_v51 = vpop.f32.mrb[33].mxu1 }
 0x2c6   : > { %v2035_v34 = vmul.f32 -1.442695, %v1026_v38  ;;  %v2033_v52 = vmul.f32 -1.442695, %v1277_v51 }
 0x2c7   : > { %2629 = vpow2.f32 %v2034_v37 }
 0x2c8   : > { %2631 = vpow2.f32 %v2032_v47  ;;  %v1030_v53 = vpop.f32.mrb[36].mxu0  ;;  %v1281_v36 = vpop.f32.mrb[34].mxu1 }
 0x2c9   : > { %2633 = vpow2.f32 %v2035_v34  ;;  %v2038_v54 = vmul.f32 -1.442695, %v1030_v53  ;;  %v2036_v46 = vmul.f32 -1.442695, %v1281_v36  ;;  %v1032_v32 = vpop.f32.mrb[37].mxu0  ;;  %v1283_v42 = vpop.f32.mrb[35].mxu1 }
 0x2ca   : > { %2635 = vpow2.f32 %v2033_v52  ;;  %v2039_v40 = vmul.f32 -1.442695, %v1032_v32  ;;  %v2037_v41 = vmul.f32 -1.442695, %v1283_v42 }
 0x2cb   : > { %2637 = vpow2.f32 %v2038_v54 }
 0x2cc   : > { %2639 = vpow2.f32 %v2036_v46  ;;  %v1036_v43 = vpop.f32.mrb[38].mxu0  ;;  %v1287_v44 = vpop.f32.mrb[36].mxu1 }
 0x2cd   : > { %v2626_v45 = vpop.eup %2625  ;;  %2641 = vpow2.f32 %v2039_v40  ;;  %v2042_v38 = vmul.f32 -1.442695, %v1036_v43  ;;  %v1038_v51 = vpop.f32.mrb[39].mxu0  ;;  %v2040_v34 = vmul.f32 -1.442695, %v1287_v44 }
 0x2ce   : > { %v1289_v37 = vpop.f32.mrb[37].mxu1  ;;  %v2628_v47 = vpop.eup %2627  ;;  %v1562_v33 = vadd.f32 1.0, %v2626_v45  ;;  %2643 = vpow2.f32 %v2037_v41  ;;  %v2043_v36 = vmul.f32 -1.442695, %v1038_v51 }
 0x2cf   : > { %v1563_v53 = vadd.f32 1.0, %v2628_v47  ;;  %2645 = vpow2.f32 %v2042_v38  ;;  %v2041_v26 = vmul.f32 -1.442695, %v1289_v37 }
 0x2d0   : > { %2647 = vrcp.f32 %v1562_v33  ;;  %v1042_v52 = vpop.f32.mrb[40].mxu0  ;;  %v1293_v32 = vpop.f32.mrb[38].mxu1 }
 0x2d1   : > { %v2630_v42 = vpop.eup %2629  ;;  %2649 = vrcp.f32 %v1563_v53  ;;  %v1044_v46 = vpop.f32.mrb[41].mxu0  ;;  %v2046_v23 = vmul.f32 -1.442695, %v1042_v52 }
 0x2d2   : > { %v1295_v54 = vpop.f32.mrb[39].mxu1  ;;  %v2632_v30 = vpop.eup %2631  ;;  %v1566_v31 = vadd.f32 1.0, %v2630_v42  ;;  %2651 = vpow2.f32 %v2040_v34 }
 0x2d3   : > { %v2634_v40 = vpop.eup %2633  ;;  %v1564_v43 = vadd.f32 1.0, %v2632_v30  ;;  %2653 = vpow2.f32 %v2043_v36 }
 0x2d4   : > { %v2636_v45 = vpop.eup %2635  ;;  %2655 = vrcp.f32 %v1566_v31  ;;  %v1567_v41 = vadd.f32 1.0, %v2634_v40  ;;  %v1048_v44 = vpop.f32.mrb[42].mxu0 }
 0x2d5   : > { %v1299_v38 = vpop.f32.mrb[40].mxu1  ;;  %v2638_v51 = vpop.eup %2637  ;;  %2657 = vrcp.f32 %v1564_v43  ;;  %v1565_v33 = vadd.f32 1.0, %v2636_v45 }
 0x2d6   : > { %v3595_v47 = vpop.f32.mrb[43].mxu0  ;;  %v2640_v53 = vpop.eup %2639  ;;  %2659 = vrcp.f32 %v1567_v41  ;;  %v1570_v28 = vadd.f32 1.0, %v2638_v51 }
 0x2d7   : > { %v3597_v29 = vpop.f32.mrb[41].mxu1  ;;  %v2642_v34 = vpop.eup %2641  ;;  %2661 = vrcp.f32 %v1565_v33  ;;  %v1568_v30 = vadd.f32 1.0, %v2640_v53 }
 0x2d8   : > { %v2644_v36 = vpop.eup %2643  ;;  %2663 = vrcp.f32 %v1570_v28  ;;  %v1571_v31 = vadd.f32 1.0, %v2642_v34  ;;  %v3600_v42 = vpop.f32.mrb[44].mxu0 }
 0x2d9   : > { %v3602_v40 = vpop.f32.mrb[42].mxu1  ;;  %v2646_v43 = vpop.eup %2645  ;;  %2665 = vrcp.f32 %v1568_v30  ;;  %v1569_v45 = vadd.f32 1.0, %v2644_v36  ;;  %v2044_v36 = vmul.f32 -1.442695, %v1293_v32  ;;  %v2050_v32 = vmul.f32 -1.442695, %v1048_v44 }
 0x2da   : > { %v3604_v27 = vpop.f32.mrb[45].mxu0  ;;  %v2648_v41 = vpop.eup %2647  ;;  %2667 = vrcp.f32 %v1571_v31  ;;  %v1574_v51 = vadd.f32 1.0, %v2646_v43  ;;  %v2047_v43 = vmul.f32 -1.442695, %v1044_v46  ;;  %v2051_v44 = vmul.f32 -1.442695, %v3595_v47 }
 0x2db   : > { %v3606_v25 = vpop.f32.mrb[43].mxu1  ;;  %v2650_v33 = vpop.eup %2649  ;;  %v1754_v28 = vmul.f32 %v2648_v41, %v3467_v48  ;;  %2669 = vrcp.f32 %v1569_v45 }
 0x2dc   : > { %v2652_v53 = vpop.eup %2651  ;;  %v1755_v34 = vmul.f32 %v2650_v33, %v3469_v55  ;;  %2671 = vrcp.f32 %v1574_v51  ;;  %v3610_v21 = vpop.f32.mrb[46].mxu0  ;;  %v2045_v33 = vmul.f32 -1.442695, %v1295_v54 }
 0x2dd   : > { %v3612_v30 = vpop.f32.mrb[44].mxu1  ;;  %v2654_v37 = vpop.eup %2653  ;;  %1818 = vst [vmem:[%s3614_s27] sm:$0xff] %v1754_v28  ;;  %v1572_v52 = vadd.f32 1.0, %v2652_v53  ;;  %2673 = vpow2.f32 %v2041_v26 }
 0x2de   : > { %v3617_v31 = vpop.f32.mrb[47].mxu0  ;;  %v2656_v48 = vpop.eup %2655  ;;  %1819 = vst [vmem:[%s3614_s27 + $0x8] sm:$0xff] %v1755_v34  ;;  %v1575_v55 = vadd.f32 1.0, %v2654_v37  ;;  %2675 = vpow2.f32 %v2046_v23 }
 0x2df   : > { %v3620_v45 = vpop.f32.mrb[45].mxu1  ;;  %v2658_v41 = vpop.eup %2657  ;;  %v1758_v51 = vmul.f32 %v2656_v48, %v3473_v11  ;;  %2677 = vrcp.f32 %v1572_v52  ;;  %v2048_v11 = vmul.f32 -1.442695, %v1299_v38 }
 0x2e0   : > { %v2660_v28 = vpop.eup %2659  ;;  %v1756_v26 = vmul.f32 %v2658_v41, %v3471_v56  ;;  %2679 = vrcp.f32 %v1575_v55  ;;  %v3624_v53 = vpop.f32.mrb[48].mxu0 }
 0x2e1   : > { %v3626_v34 = vpop.f32.mrb[46].mxu1  ;;  %v2662_v23 = vpop.eup %2661  ;;  %1820 = vst [vmem:[%s3614_s27 + $0x10] sm:$0xff] %v1758_v51  ;;  %v1759_v46 = vmul.f32 %v2660_v28, %v3477_v58  ;;  %2681 = vpow2.f32 %v2044_v36  ;;  %v2049_v58 = vmul.f32 -1.442695, %v3597_v29  ;;  %v2052_v29 = vmul.f32 -1.442695, %v3602_v40 }
 0x2e2   : > { %v3630_v37 = vpop.f32.mrb[49].mxu0  ;;  %v3632_v54 = vpop.f32.mrb[47].mxu1  ;;  %2094 = vst [vmem:[%s3614_s27 + $0x100] sm:$0xff] %v1756_v26  ;;  %v1757_v56 = vmul.f32 %v2662_v23, %v3475_v57  ;;  %2683 = vpow2.f32 %v2047_v43  ;;  %v2054_v57 = vmul.f32 -1.442695, %v3600_v42 }
 0x2e3   : > { %v2664_v52 = vpop.eup %2663  ;;  %1821 = vst [vmem:[%s3614_s27 + $0x18] sm:$0xff] %v1759_v46  ;;  %2685 = vpow2.f32 %v2045_v33  ;;  %v2055_v40 = vmul.f32 -1.442695, %v3604_v27 }
 0x2e4   : > { %v2666_v48 = vpop.eup %2665  ;;  %v1762_v55 = vmul.f32 %v2664_v52, %v3481_v60  ;;  %2095 = vst [vmem:[%s3614_s27 + $0x108] sm:$0xff] %v1757_v56  ;;  %2687 = vpow2.f32 %v2050_v32  ;;  %v3643_v41 = vpop.f32.mrb[50].mxu0  ;;  %v2053_v52 = vmul.f32 -1.442695, %v3606_v25 }
 0x2e5   : > { %v2668_v38 = vpop.eup %2667  ;;  %v1760_v36 = vmul.f32 %v2666_v48, %v3479_v59  ;;  %v3645_v43 = vpop.f32.mrb[48].mxu1  ;;  %2689 = vpow2.f32 %v2048_v11 }
 0x2e6   : > { %v2670_v47 = vpop.eup %2669  ;;  %1822 = vst [vmem:[%s3614_s27 + $0x20] sm:$0xff] %v1762_v55  ;;  %v1763_v60 = vmul.f32 %v2668_v38, %v3485_v63  ;;  %v3650_v51 = vpop.f32.mrb[51].mxu0  ;;  %2691 = vpow2.f32 %v2051_v44 }
 0x2e7   : > { %v3652_v33 = vpop.f32.mrb[49].mxu1  ;;  %v2672_v59 = vpop.eup %2671  ;;  %2096 = vst [vmem:[%s3614_s27 + $0x110] sm:$0xff] %v1760_v36  ;;  %v1761_v42 = vmul.f32 %v2670_v47, %v3483_v61  ;;  %2693 = vpow2.f32 %v2049_v58 }
 0x2e8   : > { %v2674_v28 = vpop.eup %2673  ;;  %1823 = vst [vmem:[%s3614_s27 + $0x28] sm:$0xff] %v1763_v60  ;;  %v1766_v26 = vmul.f32 %v2672_v59, %v3489_v4  ;;  %2695 = vpow2.f32 %v2054_v57  ;;  %v3660_v23 = vpop.f32.mrb[52].mxu0 }
 0x2e9   : > { %v2676_v32 = vpop.eup %2675  ;;  %2097 = vst [vmem:[%s3614_s27 + $0x118] sm:$0xff] %v1761_v42  ;;  %v1573_v63 = vadd.f32 1.0, %v2674_v28  ;;  %v3662_v46 = vpop.f32.mrb[50].mxu1  ;;  %2697 = vpow2.f32 %v2052_v29 }
 0x2ea   : > { %v2678_v11 = vpop.eup %2677  ;;  %1824 = vst [vmem:[%s3614_s27 + $0x30] sm:$0xff] %v1766_v26  ;;  %v1578_v61 = vadd.f32 1.0, %v2676_v32  ;;  %v3666_v4 = vpop.f32.mrb[53].mxu0 }
 0x2eb   : > { %v2680_v56 = vpop.eup %2679  ;;  %v1764_v44 = vmul.f32 %v2678_v11, %v3487_v0  ;;  %2699 = vrcp.f32 %v1573_v63  ;;  %v3669_v48 = vpop.f32.mrb[51].mxu1 }
 0x2ec   : > { %v2682_v27 = vpop.eup %2681  ;;  %v1767_v55 = vmul.f32 %v2680_v56, %v3493_v62  ;;  %2701 = vrcp.f32 %v1578_v61  ;;  %v3673_v36 = vpop.f32.mrb[54].mxu0 }
 0x2ed   : > { %v2684_v58 = vpop.eup %2683  ;;  %2098 = vst [vmem:[%s3614_s27 + $0x120] sm:$0xff] %v1764_v44  ;;  %v1576_v38 = vadd.f32 1.0, %v2682_v27  ;;  %2703 = vpow2.f32 %v2055_v40  ;;  %v3675_v25 = vpop.f32.mrb[52].mxu1 }
 0x2ee   : > { %v2686_v57 = vpop.eup %2685  ;;  %1825 = vst [vmem:[%s3614_s27 + $0x38] sm:$0xff] %v1767_v55  ;;  %v1579_v47 = vadd.f32 1.0, %v2684_v58  ;;  %2705 = vpow2.f32 %v2053_v52  ;;  %v3678_v0 = vpop.f32.mrb[55].mxu0  ;;  %v2058_v58 = vmul.f32 -1.442695, %v3610_v21 }
 0x2ef   : > { %v2688_v60 = vpop.eup %2687  ;;  %2707 = vrcp.f32 %v1576_v38  ;;  %v1577_v29 = vadd.f32 1.0, %v2686_v57  ;;  %v3680_v59 = vpop.f32.mrb[53].mxu1 }
 0x2f0   : > { %v2690_v62 = vpop.eup %2689  ;;  %2709 = vrcp.f32 %v1579_v47  ;;  %v1582_v42 = vadd.f32 1.0, %v2688_v60  ;;  %v3682_v32 = vpop.f32.mrb[56].mxu0  ;;  %v2056_v47 = vmul.f32 -1.442695, %v3612_v30 }
 0x2f1   : > { %v2692_v28 = vpop.eup %2691  ;;  %2711 = vrcp.f32 %v1577_v29  ;;  %v1580_v26 = vadd.f32 1.0, %v2690_v62  ;;  %v3684_v63 = vpop.f32.mrb[54].mxu1 }
 0x2f2   : > { %v2694_v40 = vpop.eup %2693  ;;  %2713 = vrcp.f32 %v1582_v42  ;;  %v1583_v11 = vadd.f32 1.0, %v2692_v28  ;;  %v3686_v61 = vpop.f32.mrb[57].mxu0 }
 0x2f3   : > { %v2696_v52 = vpop.eup %2695  ;;  %2715 = vrcp.f32 %v1580_v26  ;;  %v1581_v56 = vadd.f32 1.0, %v2694_v40  ;;  %v3688_v44 = vpop.f32.mrb[55].mxu1 }
 0x2f4   : > { %v2698_v27 = vpop.eup %2697  ;;  %2717 = vrcp.f32 %v1583_v11  ;;  %v1586_v55 = vadd.f32 1.0, %v2696_v52  ;;  %v3692_v60 = vpop.f32.mrb[58].mxu0  ;;  %v2059_v52 = vmul.f32 -1.442695, %v3617_v31 }
 0x2f5   : > { %v2700_v38 = vpop.eup %2699  ;;  %2719 = vrcp.f32 %v1581_v56  ;;  %v1584_v57 = vadd.f32 1.0, %v2698_v27  ;;  %v3694_v29 = vpop.f32.mrb[56].mxu1 }
 0x2f6   : > { %v2702_v62 = vpop.eup %2701  ;;  %v1765_v42 = vmul.f32 %v2700_v38, %v3491_v5  ;;  %2721 = vrcp.f32 %v1586_v55  ;;  %v3697_v28 = vpop.f32.mrb[59].mxu0  ;;  %v2057_v5 = vmul.f32 -1.442695, %v3620_v45  ;;  %v2060_v45 = vmul.f32 -1.442695, %v3626_v34 }
 0x2f7   : > { %v3699_v26 = vpop.f32.mrb[57].mxu1  ;;  %v2704_v21 = vpop.eup %2703  ;;  %v1770_v40 = vmul.f32 %v2702_v62, %v3497_v9  ;;  %2723 = vrcp.f32 %v1584_v57 }
 0x2f8   : > { %3955 = vst [vmem:[#allocation38_spill] sm:$0xff] %v3699_v26  ;;  %v2706_v11 = vpop.eup %2705  ;;  %2099 = vst [vmem:[%s3614_s27 + $0x128] sm:$0xff] %v1765_v42  ;;  %v1587_v30 = vadd.f32 1.0, %v2704_v21  ;;  %2725 = vpow2.f32 %v2058_v58  ;;  %v3706_v55 = vpop.f32.mrb[60].mxu0  ;;  %v2062_v58 = vmul.f32 -1.442695, %v3624_v53 }
 0x2f9   : > { %v2708_v56 = vpop.eup %2707  ;;  %1826 = vst [vmem:[%s3614_s27 + $0x40] sm:$0xff] %v1770_v40  ;;  %v1585_v27 = vadd.f32 1.0, %v2706_v11  ;;  %2727 = vpow2.f32 %v2056_v47  ;;  %v3708_v38 = vpop.f32.mrb[58].mxu1  ;;  %v2061_v11 = vmul.f32 -1.442695, %v3632_v54 }
 0x2fa   : > { %v2710_v26 = vpop.eup %2709  ;;  %v1768_v9 = vmul.f32 %v2708_v56, %v3495_v2  ;;  %2729 = vrcp.f32 %v1587_v30  ;;  %v3712_v57 = vpop.f32.mrb[61].mxu0  ;;  %v2063_v2 = vmul.f32 -1.442695, %v3630_v37  ;;  %v2066_v37 = vmul.f32 -1.442695, %v3643_v41 }
 0x2fb   : > { %v3714_v31 = vpop.f32.mrb[59].mxu1  ;;  %v2712_v62 = vpop.eup %2711  ;;  %v1771_v47 = vmul.f32 %v2710_v26, %v3501_v24  ;;  %2731 = vrcp.f32 %v1585_v27  ;;  %v2064_v56 = vmul.f32 -1.442695, %v3645_v43  ;;  %v2067_v41 = vmul.f32 -1.442695, %v3650_v51 }
 0x2fc   : > { %v2714_v42 = vpop.eup %2713  ;;  %2100 = vst [vmem:[%s3614_s27 + $0x130] sm:$0xff] %v1768_v9  ;;  %v1769_v21 = vmul.f32 %v2712_v62, %v3499_v20  ;;  %2733 = vpow2.f32 %v2059_v52  ;;  %v3724_v24 = vpop.f32.mrb[62].mxu0  ;;  %v2065_v51 = vmul.f32 -1.442695, %v3652_v33 }
 0x2fd   : > { %v2716_v53 = vpop.eup %2715  ;;  %1827 = vst [vmem:[%s3614_s27 + $0x48] sm:$0xff] %v1771_v47  ;;  %v1774_v40 = vmul.f32 %v2714_v42, %v3505_v39  ;;  %2735 = vpow2.f32 %v2057_v5  ;;  %v3726_v26 = vpop.f32.mrb[60].mxu1  ;;  %v2070_v42 = vmul.f32 -1.442695, %v3660_v23 }
 0x2fe   : > { %v2718_v34 = vpop.eup %2717  ;;  %2101 = vst [vmem:[%s3614_s27 + $0x138] sm:$0xff] %v1769_v21  ;;  %v1772_v20 = vmul.f32 %v2716_v53, %v3503_v35  ;;  %2737 = vpow2.f32 %v2062_v58  ;;  %v3731_v30 = vpop.f32.mrb[63].mxu0 }
 0x2ff   : > { %v3733_v52 = vpop.f32.mrb[61].mxu1  ;;  %v2720_v39 = vpop.eup %2719  ;;  %1828 = vst [vmem:[%s3614_s27 + $0x50] sm:$0xff] %v1774_v40  ;;  %v1775_v54 = vmul.f32 %v2718_v34, %v3509_v50  ;;  %2739 = vpow2.f32 %v2060_v45 }
 0x300   : > { %v2722_v27 = vpop.eup %2721  ;;  %2102 = vst [vmem:[%s3614_s27 + $0x140] sm:$0xff] %v1772_v20  ;;  %v1773_v35 = vmul.f32 %v2720_v39, %v3507_v49  ;;  %2741 = vpow2.f32 %v2063_v2  ;;  %v3743_v58 = vpop.f32.mrb[62].mxu1 }
 0x301   : > { %v2724_v5 = vpop.eup %2723  ;;  %1829 = vst [vmem:[%s3614_s27 + $0x58] sm:$0xff] %v1775_v54  ;;  %v1778_v9 = vmul.f32 %v2722_v27, %v3513_v3  ;;  %2743 = vpow2.f32 %v2061_v11  ;;  %v3747_v62 = vpop.f32.mrb[63].mxu1 }
 0x302   : > { %v2726_v50 = vpop.eup %2725  ;;  %2103 = vst [vmem:[%s3614_s27 + $0x148] sm:$0xff] %v1773_v35  ;;  %v1776_v43 = vmul.f32 %v2724_v5, %v3511_v1  ;;  %2745 = vpow2.f32 %v2066_v37 }
 0x303   : > { %v2728_v47 = vpop.eup %2727  ;;  %1830 = vst [vmem:[%s3614_s27 + $0x60] sm:$0xff] %v1778_v9  ;;  %v1590_v49 = vadd.f32 1.0, %v2726_v50  ;;  %2747 = vpow2.f32 %v2064_v56  ;;  %v2068_v9 = vmul.f32 -1.442695, %v3662_v46  ;;  %v2069_v46 = vmul.f32 -1.442695, %v3669_v48 }
 0x304   : > { %v2730_v45 = vpop.eup %2729  ;;  %2104 = vst [vmem:[%s3614_s27 + $0x150] sm:$0xff] %v1776_v43  ;;  %v1588_v3 = vadd.f32 1.0, %v2728_v47  ;;  %2749 = vpow2.f32 %v2067_v41  ;;  %v2071_v47 = vmul.f32 -1.442695, %v3666_v4  ;;  %v2074_v4 = vmul.f32 -1.442695, %v3673_v36 }
 0x305   : > { %v2732_v21 = vpop.eup %2731  ;;  %v1779_v1 = vmul.f32 %v2730_v45, %v3517_v7  ;;  %2751 = vrcp.f32 %v1590_v49  ;;  %v2075_v48 = vmul.f32 -1.442695, %v3678_v0  ;;  %v2073_v36 = vmul.f32 -1.442695, %v3680_v59 }
 0x306   : > { %v2734_v2 = vpop.eup %2733  ;;  %v1777_v53 = vmul.f32 %v2732_v21, %v3515_v6  ;;  %2753 = vrcp.f32 %v1588_v3 }
 0x307   : > { %v2736_v40 = vpop.eup %2735  ;;  %1831 = vst [vmem:[%s3614_s27 + $0x68] sm:$0xff] %v1779_v1  ;;  %v1591_v11 = vadd.f32 1.0, %v2734_v2  ;;  %2755 = vpow2.f32 %v2065_v51 }
 0x308   : > { %v2738_v33 = vpop.eup %2737  ;;  %2105 = vst [vmem:[%s3614_s27 + $0x158] sm:$0xff] %v1777_v53  ;;  %v1589_v34 = vadd.f32 1.0, %v2736_v40  ;;  %2757 = vpow2.f32 %v2070_v42 }
 0x309   : > { %v2740_v20 = vpop.eup %2739  ;;  %2759 = vrcp.f32 %v1591_v11  ;;  %v1594_v37 = vadd.f32 1.0, %v2738_v33 }
 0x30a   : > { %v2742_v23 = vpop.eup %2741  ;;  %2761 = vrcp.f32 %v1589_v34  ;;  %v1592_v39 = vadd.f32 1.0, %v2740_v20 }
 0x30b   : > { %v2744_v7 = vpop.eup %2743  ;;  %2763 = vrcp.f32 %v1594_v37  ;;  %v1595_v54 = vadd.f32 1.0, %v2742_v23  ;;  %v2076_v37 = vmul.f32 -1.442695, %v3684_v63 }
 0x30c   : > { %v2746_v56 = vpop.eup %2745  ;;  %2765 = vrcp.f32 %v1592_v39  ;;  %v1593_v6 = vadd.f32 1.0, %v2744_v7 }
 0x30d   : > { %v2748_v27 = vpop.eup %2747  ;;  %2767 = vrcp.f32 %v1595_v54  ;;  %v1598_v35 = vadd.f32 1.0, %v2746_v56 }
 0x30e   : > { %v2750_v41 = vpop.eup %2749  ;;  %2769 = vrcp.f32 %v1593_v6  ;;  %v1596_v5 = vadd.f32 1.0, %v2748_v27  ;;  %v3956_v27 = vld [vmem:[#allocation11_spill] sm:$0xff] }
 0x30f   : > { %v2752_v50 = vpop.eup %2751  ;;  %2771 = vrcp.f32 %v1598_v35  ;;  %v1599_v43 = vadd.f32 1.0, %v2750_v41  ;;  %v3957_v41 = vld [vmem:[#allocation13_spill] sm:$0xff] }
 0x310   : > { %v2754_v49 = vpop.eup %2753  ;;  %v1782_v51 = vmul.f32 %v2752_v50, %v3521_v10  ;;  %2773 = vrcp.f32 %v1596_v5 }
 0x311   : > { %v2756_v45 = vpop.eup %2755  ;;  %v1780_v3 = vmul.f32 %v2754_v49, %v3519_v8  ;;  %2775 = vrcp.f32 %v1599_v43  ;;  %v2072_v8 = vmul.f32 -1.442695, %v3675_v25  ;;  %v2078_v25 = vmul.f32 -1.442695, %v3682_v32 }
 0x312   : > { %v2758_v42 = vpop.eup %2757  ;;  %1832 = vst [vmem:[%s3614_s27 + $0x70] sm:$0xff] %v1782_v51  ;;  %v1597_v21 = vadd.f32 1.0, %v2756_v45  ;;  %2777 = vpow2.f32 %v2068_v9 }
 0x313   : > { %v2760_v1 = vpop.eup %2759  ;;  %2106 = vst [vmem:[%s3614_s27 + $0x160] sm:$0xff] %v1780_v3  ;;  %v1602_v2 = vadd.f32 1.0, %v2758_v42  ;;  %2779 = vpow2.f32 %v2071_v47 }
 0x314   : > { %v2762_v10 = vpop.eup %2761  ;;  %v1783_v53 = vmul.f32 %v2760_v1, %v3525_v13  ;;  %2781 = vrcp.f32 %v1597_v21 }
 0x315   : > { %v2764_v40 = vpop.eup %2763  ;;  %v1781_v11 = vmul.f32 %v2762_v10, %v3523_v12  ;;  %2783 = vrcp.f32 %v1602_v2  ;;  %v2083_v10 = vmul.f32 -1.442695, %v3697_v28  ;;  %v2086_v28 = vmul.f32 -1.442695, %v3706_v55 }
 0x316   : > { %v2766_v33 = vpop.eup %2765  ;;  %1833 = vst [vmem:[%s3614_s27 + $0x78] sm:$0xff] %v1783_v53  ;;  %v1786_v34 = vmul.f32 %v2764_v40, %v3529_v15  ;;  %2785 = vpow2.f32 %v2069_v46  ;;  %v3958_v40 = vld [vmem:[#allocation38_spill] sm:$0xff]  ;;  %v2085_v55 = vmul.f32 -1.442695, %v3714_v31 }
 0x317   : > { %v2768_v20 = vpop.eup %2767  ;;  %2107 = vst [vmem:[%s3614_s27 + $0x168] sm:$0xff] %v1781_v11  ;;  %v1784_v13 = vmul.f32 %v2766_v33, %v3527_v14  ;;  %2787 = vpow2.f32 %v2074_v4  ;;  %v2079_v14 = vmul.f32 -1.442695, %v3686_v61  ;;  %v2081_v11 = vmul.f32 -1.442695, %v3958_v40  ;;  %v3959_v33 = vld [vmem:[#allocation12_spill] sm:$0xff] }
 0x318   : > { %v2770_v12 = vpop.eup %2769  ;;  %1834 = vst [vmem:[%s3614_s27 + $0x80] sm:$0xff] %v1786_v34  ;;  %v1787_v0 = vmul.f32 %v2768_v20, %v3533_v17  ;;  %2789 = vpow2.f32 %v2072_v8  ;;  %v2077_v17 = vmul.f32 -1.442695, %v3688_v44  ;;  %v3960_v20 = vld [vmem:[#allocation15_spill] sm:$0xff]  ;;  %v3965_v31 = vld [vmem:[#allocation18_spill] sm:$0xff] }
 0x319   : > { %v2772_v15 = vpop.eup %2771  ;;  %2108 = vst [vmem:[%s3614_s27 + $0x170] sm:$0xff] %v1784_v13  ;;  %v1785_v59 = vmul.f32 %v2770_v12, %v3531_v16  ;;  %2791 = vpow2.f32 %v2075_v48 }
 0x31a   : > { %v2774_v23 = vpop.eup %2773  ;;  %1835 = vst [vmem:[%s3614_s27 + $0x88] sm:$0xff] %v1787_v0  ;;  %v1790_v32 = vmul.f32 %v2772_v15, %v3537_v19  ;;  %2793 = vpow2.f32 %v2073_v36  ;;  %v2082_v19 = vmul.f32 -1.442695, %v3692_v60  ;;  %v2084_v15 = vmul.f32 -1.442695, %v3708_v38 }
 0x31b   : > { %v2776_v39 = vpop.eup %2775  ;;  %2109 = vst [vmem:[%s3614_s27 + $0x178] sm:$0xff] %v1785_v59  ;;  %v1788_v63 = vmul.f32 %v2774_v23, %v3535_v18  ;;  %2795 = vpow2.f32 %v2078_v25  ;;  %v2080_v18 = vmul.f32 -1.442695, %v3694_v29  ;;  %v2090_v38 = vmul.f32 -1.442695, %v3724_v24  ;;  %v3966_v24 = vld [vmem:[#allocation21_spill] sm:$0xff] }
 0x31c   : > { %v2778_v7 = vpop.eup %2777  ;;  %1836 = vst [vmem:[%s3614_s27 + $0x90] sm:$0xff] %v1790_v32  ;;  %v1791_v16 = vmul.f32 %v2776_v39, %v3541_v22  ;;  %2797 = vpow2.f32 %v2076_v37  ;;  %v2087_v32 = vmul.f32 -1.442695, %v3712_v57  ;;  %v3962_v39 = vld [vmem:[#allocation17_spill] sm:$0xff] }
 0x31d   : > { %v2780_v54 = vpop.eup %2779  ;;  %2110 = vst [vmem:[%s3614_s27 + $0x180] sm:$0xff] %v1788_v63  ;;  %v1600_v61 = vadd.f32 1.0, %v2778_v7  ;;  %2799 = vpow2.f32 %v2079_v14  ;;  %v3961_v14 = vld [vmem:[#allocation14_spill] sm:$0xff] }
 0x31e   : > { %v2782_v56 = vpop.eup %2781  ;;  %1837 = vst [vmem:[%s3614_s27 + $0x98] sm:$0xff] %v1791_v16  ;;  %v1603_v44 = vadd.f32 1.0, %v2780_v54  ;;  %2801 = vpow2.f32 %v2077_v17  ;;  %v3963_v16 = vld [vmem:[#allocation16_spill] sm:$0xff] }
 0x31f   : > { %v2784_v6 = vpop.eup %2783  ;;  %v1789_v35 = vmul.f32 %v2782_v56, %v3956_v27  ;;  %2803 = vrcp.f32 %v1600_v61  ;;  %v2088_v56 = vmul.f32 -1.442695, %v3726_v26  ;;  %v3967_v26 = vld [vmem:[#allocation20_spill] sm:$0xff] }
 0x320   : > { %v2786_v22 = vpop.eup %2785  ;;  %v1794_v5 = vmul.f32 %v2784_v6, %v3957_v41  ;;  %2805 = vrcp.f32 %v1603_v44  ;;  %v2091_v6 = vmul.f32 -1.442695, %v3731_v30  ;;  %v3968_v30 = vld [vmem:[#allocation23_spill] sm:$0xff] }
 0x321   : > { %v2788_v9 = vpop.eup %2787  ;;  %2111 = vst [vmem:[%s3614_s27 + $0x188] sm:$0xff] %v1789_v35  ;;  %v1601_v50 = vadd.f32 1.0, %v2786_v22  ;;  %2807 = vpow2.f32 %v2082_v19  ;;  %v3964_v19 = vld [vmem:[#allocation19_spill] sm:$0xff]  ;;  %v2089_v22 = vmul.f32 -1.442695, %v3733_v52 }
 0x322   : > { %v2790_v60 = vpop.eup %2789  ;;  %1838 = vst [vmem:[%s3614_s27 + $0xa0] sm:$0xff] %v1794_v5  ;;  %v1606_v43 = vadd.f32 1.0, %v2788_v9  ;;  %2809 = vpow2.f32 %v2080_v18  ;;  %v2092_v9 = vmul.f32 -1.442695, %v3743_v58 }
 0x323   : > { %v2792_v47 = vpop.eup %2791  ;;  %2811 = vrcp.f32 %v1601_v50  ;;  %v1604_v49 = vadd.f32 1.0, %v2790_v60 }
 0x324   : > { %v2794_v29 = vpop.eup %2793  ;;  %2813 = vrcp.f32 %v1606_v43  ;;  %v1607_v51 = vadd.f32 1.0, %v2792_v47  ;;  %v3969_v47 = vld [vmem:[#allocation22_spill] sm:$0xff] }
 0x325   : > { %v2796_v45 = vpop.eup %2795  ;;  %2815 = vrcp.f32 %v1604_v49  ;;  %v1605_v3 = vadd.f32 1.0, %v2794_v29 }
 0x326   : > { %v2798_v42 = vpop.eup %2797  ;;  %2817 = vrcp.f32 %v1607_v51  ;;  %v1610_v21 = vadd.f32 1.0, %v2796_v45  ;;  %v2093_v51 = vmul.f32 -1.442695, %v3747_v62 }
 0x327   : > { %v2800_v46 = vpop.eup %2799  ;;  %2819 = vrcp.f32 %v1605_v3  ;;  %v1608_v1 = vadd.f32 1.0, %v2798_v42  ;;  %v3970_v42 = vld [vmem:[#allocation25_spill] sm:$0xff] }
 0x328   : > { %v2802_v2 = vpop.eup %2801  ;;  %2821 = vrcp.f32 %v1610_v21  ;;  %v1611_v4 = vadd.f32 1.0, %v2800_v46 }
 0x329   : > { %v2804_v53 = vpop.eup %2803  ;;  %2823 = vrcp.f32 %v1608_v1  ;;  %v1609_v8 = vadd.f32 1.0, %v2802_v2  ;;  %v3971_v1 = vld [vmem:[#allocation24_spill] sm:$0xff] }
 0x32a   : > { %v2806_v48 = vpop.eup %2805  ;;  %v1792_v34 = vmul.f32 %v2804_v53, %v3959_v33  ;;  %2825 = vrcp.f32 %v1611_v4 }
 0x32b   : > { %v2808_v36 = vpop.eup %2807  ;;  %v1795_v13 = vmul.f32 %v2806_v48, %v3960_v20  ;;  %2827 = vrcp.f32 %v1609_v8 }
 0x32c   : > { %v2810_v25 = vpop.eup %2809  ;;  %2112 = vst [vmem:[%s3614_s27 + $0x190] sm:$0xff] %v1792_v34  ;;  %v1614_v12 = vadd.f32 1.0, %v2808_v36  ;;  %2829 = vpow2.f32 %v2083_v10 }
 0x32d   : > { %v2812_v0 = vpop.eup %2811  ;;  %1839 = vst [vmem:[%s3614_s27 + $0xa8] sm:$0xff] %v1795_v13  ;;  %v1612_v37 = vadd.f32 1.0, %v2810_v25  ;;  %2831 = vpow2.f32 %v2081_v11 }
 0x32e   : > { %v2814_v59 = vpop.eup %2813  ;;  %v1793_v23 = vmul.f32 %v2812_v0, %v3961_v14  ;;  %2833 = vrcp.f32 %v1614_v12 }
 0x32f   : > { %v2816_v17 = vpop.eup %2815  ;;  %v1798_v63 = vmul.f32 %v2814_v59, %v3962_v39  ;;  %2835 = vrcp.f32 %v1612_v37  ;;  %v3972_v59 = vld [vmem:[#allocation27_spill] sm:$0xff] }
 0x330   : > { %v2818_v7 = vpop.eup %2817  ;;  %2113 = vst [vmem:[%s3614_s27 + $0x198] sm:$0xff] %v1793_v23  ;;  %v1796_v54 = vmul.f32 %v2816_v17, %v3963_v16  ;;  %2837 = vpow2.f32 %v2086_v28 }
 0x331   : > { %v2820_v61 = vpop.eup %2819  ;;  %1840 = vst [vmem:[%s3614_s27 + $0xb0] sm:$0xff] %v1798_v63  ;;  %v1799_v57 = vmul.f32 %v2818_v7, %v3964_v19  ;;  %2839 = vpow2.f32 %v2084_v15  ;;  %v3974_v7 = vld [vmem:[#allocation29_spill] sm:$0xff] }
 0x332   : > { %v2822_v44 = vpop.eup %2821  ;;  %2114 = vst [vmem:[%s3614_s27 + $0x1a0] sm:$0xff] %v1796_v54  ;;  %v1797_v18 = vmul.f32 %v2820_v61, %v3965_v31  ;;  %2841 = vpow2.f32 %v2087_v32  ;;  %v3973_v32 = vld [vmem:[#allocation26_spill] sm:$0xff] }
 0x333   : > { %v2824_v27 = vpop.eup %2823  ;;  %1841 = vst [vmem:[%s3614_s27 + $0xb8] sm:$0xff] %v1799_v57  ;;  %v1802_v35 = vmul.f32 %v2822_v44, %v3966_v24  ;;  %2843 = vpow2.f32 %v2085_v55  ;;  %v3976_v57 = vld [vmem:[#allocation31_spill] sm:$0xff]  ;;  %v3977_v31 = vld [vmem:[#allocation30_spill] sm:$0xff] }
 0x334   : > { %v2826_v41 = vpop.eup %2825  ;;  %2115 = vst [vmem:[%s3614_s27 + $0x1a8] sm:$0xff] %v1797_v18  ;;  %v1800_v5 = vmul.f32 %v2824_v27, %v3967_v26  ;;  %2845 = vpow2.f32 %v2090_v38  ;;  %v3975_v38 = vld [vmem:[#allocation28_spill] sm:$0xff]  ;;  %v3978_v27 = vld [vmem:[#allocation33_spill] sm:$0xff] }
 0x335   : > { %v2828_v50 = vpop.eup %2827  ;;  %1842 = vst [vmem:[%s3614_s27 + $0xc0] sm:$0xff] %v1802_v35  ;;  %v1803_v60 = vmul.f32 %v2826_v41, %v3968_v30  ;;  %2847 = vpow2.f32 %v2088_v56  ;;  %v3981_v30 = vld [vmem:[#allocation34_spill] sm:$0xff] }
 0x336   : > { %v2830_v43 = vpop.eup %2829  ;;  %2116 = vst [vmem:[%s3614_s27 + $0x1b0] sm:$0xff] %v1800_v5  ;;  %v1801_v49 = vmul.f32 %v2828_v50, %v3969_v47  ;;  %2849 = vpow2.f32 %v2091_v6  ;;  %v3980_v5 = vld [vmem:[#allocation35_spill] sm:$0xff] }
 0x337   : > { %v2832_v29 = vpop.eup %2831  ;;  %1843 = vst [vmem:[%s3614_s27 + $0xc8] sm:$0xff] %v1803_v60  ;;  %v1615_v52 = vadd.f32 1.0, %v2830_v43  ;;  %2851 = vpow2.f32 %v2089_v22  ;;  %v3979_v22 = vld [vmem:[#allocation32_spill] sm:$0xff] }
 0x338   : > { %v2834_v45 = vpop.eup %2833  ;;  %2117 = vst [vmem:[%s3614_s27 + $0x1b8] sm:$0xff] %v1801_v49  ;;  %v1613_v58 = vadd.f32 1.0, %v2832_v29  ;;  %2853 = vpow2.f32 %v2092_v9  ;;  %v3982_v43 = vld [vmem:[#allocation36_spill] sm:$0xff]  ;;  %v3983_v29 = vld [vmem:[#allocation37_spill] sm:$0xff] }
 0x339   : > { %v2836_v3 = vpop.eup %2835  ;;  %v1806_v21 = vmul.f32 %v2834_v45, %v3970_v42  ;;  %2855 = vrcp.f32 %v1615_v52 }
 0x33a   : > { %v2838_v46 = vpop.eup %2837  ;;  %v1804_v2 = vmul.f32 %v2836_v3, %v3971_v1  ;;  %2857 = vrcp.f32 %v1613_v58 }
 0x33b   : > { %v2840_v4 = vpop.eup %2839  ;;  %1844 = vst [vmem:[%s3614_s27 + $0xd0] sm:$0xff] %v1806_v21  ;;  %v1618_v10 = vadd.f32 1.0, %v2838_v46  ;;  %2859 = vpow2.f32 %v2093_v51 }
 0x33c   : > { %v2842_v53 = vpop.eup %2841  ;;  %2118 = vst [vmem:[%s3614_s27 + $0x1c0] sm:$0xff] %v1804_v2  ;;  %v1616_v62 = vadd.f32 1.0, %v2840_v4 }
 0x33d   : > { %v2844_v8 = vpop.eup %2843  ;;  %2861 = vrcp.f32 %v1618_v10  ;;  %v1619_v40 = vadd.f32 1.0, %v2842_v53 }
 0x33e   : > { %v2846_v11 = vpop.eup %2845  ;;  %2863 = vrcp.f32 %v1616_v62  ;;  %v1617_v48 = vadd.f32 1.0, %v2844_v8 }
 0x33f   : > { %v2848_v33 = vpop.eup %2847  ;;  %2865 = vrcp.f32 %v1619_v40  ;;  %v1622_v34 = vadd.f32 1.0, %v2846_v11 }
 0x340   : > { %v2850_v36 = vpop.eup %2849  ;;  %2867 = vrcp.f32 %v1617_v48  ;;  %v1620_v20 = vadd.f32 1.0, %v2848_v33 }
 0x341   : > { %v2852_v13 = vpop.eup %2851  ;;  %2869 = vrcp.f32 %v1622_v34  ;;  %v1623_v25 = vadd.f32 1.0, %v2850_v36 }
 0x342   : > { %v2854_v12 = vpop.eup %2853  ;;  %2871 = vrcp.f32 %v1620_v20  ;;  %v1621_v28 = vadd.f32 1.0, %v2852_v13 }
 0x343   : > { %v2856_v0 = vpop.eup %2855  ;;  %2873 = vrcp.f32 %v1623_v25  ;;  %v1624_v37 = vadd.f32 1.0, %v2854_v12 }
 0x344   : > { %v2858_v15 = vpop.eup %2857  ;;  %v1807_v14 = vmul.f32 %v2856_v0, %v3972_v59  ;;  %2875 = vrcp.f32 %v1621_v28 }
 0x345   : > { %v2860_v23 = vpop.eup %2859  ;;  %v1805_v17 = vmul.f32 %v2858_v15, %v3973_v32  ;;  %2877 = vrcp.f32 %v1624_v37 }
 0x346   : > { %1845 = vst [vmem:[%s3614_s27 + $0xd8] sm:$0xff] %v1807_v14  ;;  %v1625_v39 = vadd.f32 1.0, %v2860_v23 }
 0x347   : > { %v2862_v63 = vpop.eup %2861  ;;  %2119 = vst [vmem:[%s3614_s27 + $0x1c8] sm:$0xff] %v1805_v17 }
 0x348   : > { %v2864_v55 = vpop.eup %2863  ;;  %v1810_v16 = vmul.f32 %v2862_v63, %v3974_v7  ;;  %2879 = vrcp.f32 %v1625_v39 }
 0x349   : > { %v2866_v54 = vpop.eup %2865  ;;  %v1808_v61 = vmul.f32 %v2864_v55, %v3975_v38 }
 0x34a   : > { %v2868_v19 = vpop.eup %2867  ;;  %1846 = vst [vmem:[%s3614_s27 + $0xe0] sm:$0xff] %v1810_v16  ;;  %v1811_v56 = vmul.f32 %v2866_v54, %v3976_v57 }
 0x34b   : > { %v2870_v44 = vpop.eup %2869  ;;  %2120 = vst [vmem:[%s3614_s27 + $0x1d0] sm:$0xff] %v1808_v61  ;;  %v1809_v18 = vmul.f32 %v2868_v19, %v3977_v31 }
 0x34c   : > { %v2872_v6 = vpop.eup %2871  ;;  %1847 = vst [vmem:[%s3614_s27 + $0xe8] sm:$0xff] %v1811_v56  ;;  %v1814_v24 = vmul.f32 %v2870_v44, %v3978_v27 }
 0x34d   : > { %v2874_v35 = vpop.eup %2873  ;;  %2121 = vst [vmem:[%s3614_s27 + $0x1d8] sm:$0xff] %v1809_v18  ;;  %v1812_v41 = vmul.f32 %v2872_v6, %v3979_v22 }
 0x34e   : > { %v2876_v26 = vpop.eup %2875  ;;  %1848 = vst [vmem:[%s3614_s27 + $0xf0] sm:$0xff] %v1814_v24  ;;  %v1815_v9 = vmul.f32 %v2874_v35, %v3980_v5 }
 0x34f   : > { %v2878_v50 = vpop.eup %2877  ;;  %2122 = vst [vmem:[%s3614_s27 + $0x1e0] sm:$0xff] %v1812_v41  ;;  %v1813_v60 = vmul.f32 %v2876_v26, %v3981_v30 }
 0x350   : > { %1849 = vst [vmem:[%s3614_s27 + $0xf8] sm:$0xff] %v1815_v9  ;;  %v1816_v47 = vmul.f32 %v2878_v50, %v3982_v43 }
 0x351   : > { %2123 = vst [vmem:[%s3614_s27 + $0x1e8] sm:$0xff] %v1813_v60 }
 0x352   : > { %v2880_v49 = vpop.eup %2879  ;;  %2124 = vst [vmem:[%s3614_s27 + $0x1f0] sm:$0xff] %v1816_v47 }
 0x353   : > { %v1817_v52 = vmul.f32 %v2880_v49, %v3983_v29 }
 0x355   : > { %2125 = vst [vmem:[%s3614_s27 + $0x1f8] sm:$0xff] %v1817_v52 }
 0x356   : > { %2952 = shalt.err (!%p2949_p7)
}
 0x357   : > { %s2953_s26 = scalar_lea.hbm %s3861_s7, 8192  ;;  %s2957_s3 = scalar_lea.hbm %s3911_s2, 16384 }
 0x358   : > { %p2954_p9 = scmp.ne.s32.totalorder %s3861_s7, %s2953_s26  ;;  %p2958_p5 = scmp.lt.u32.totalorder %s3861_s7, %s3911_s2 }
 0x359   : > { %p2959_p11 = scmp.lt.u32.totalorder %s2957_s3, %s2953_s26  ;;  %p2961_p4 = scmp.lt.u32.totalorder %s2953_s26, %s3861_s7 }
 0x35a   : > { %p2955_p1 = pnand %p2954_p9, %p3131_p12 }
 0x35b   : > { %p2960_p2 = por %p2959_p11, %p2958_p5 }
 0x35c   : > { %p2956_p0 = pneg %p2955_p1 }
 0x35d   : > { %p2962_p6 = por %p2961_p4, %p2960_p2 }
 0x35f   : > { %p2963_p8 = pnand %p2962_p6, %p2956_p0 }
 0x361   : > { %2966 = shalt.err (!%p2963_p8)
}
 0x362   : > { %s3020_s4 = smov 256   ;;  %s3021_s5 = smov 16  }
 0x363   : > { %2246 = dma.vmem_to_hbm [thread:$0]  (%p3131_p12), %s3863_s23, 8192, %s3861_s7, %s1884_s13, %s3020_s4, %s3020_s4, %s3021_s5  }
 0x364 PF: > { %s1913_s27 = sand.u32 1, %s2997_s9   ;;  %p3984_p10 = scmp.ne.s32.totalorder %s3916_s16, 0 }
 0x365   : > { %p3985_p13 = scmp.ge.s32.totalorder %s3009_s12, 2  ;;  %s1914_s22 = scalar_lea.sflag [#allocation4], %s1913_s27 }
 0x367   : > { %p2257_p3 = pnand %p3985_p13, %p3984_p10 }
 0x369   : > { %2992 = dma.done.wait (!%p2257_p3), %s1914_s22, 8192  }
 0x36a   : > { %2994 = vsyncadd (!%p2257_p3), %s1914_s22, 4294959104  ;;  %p16_p7 = scmp.ge.s32.totalorder %s3093_s21, 4   ;;  %s3986_s9 = smov %s3001_s10 }
 0x36b   : > { %s3987_s10 = smov %s3005_s11  ;;  %s3988_s11 = smov %s3127_s8 }
 0x36c   : > { %s3989_s12 = smov %s3093_s21  ;;  %18 = sbr.rel (!%p16_p7) target bundleno = 6 (0x6), region = 78 }
 0x373   :  { %1919 = vsyncpa [#allocation3], 1 }
 0x374   :  { %1921 = vsyncpa [#allocation3 + $0x1], 1 }
 0x375   :  { %1922 = vsyncpa [#allocation6], 1 }
 0x376   :  { %1923 = vsyncpa [#allocation4], 1 }
 0x377   :  { %1925 = vsyncpa [#allocation4 + $0x1], 1 }

</bundles_post_ra>
